<compile_context>
chip_gen: v6e
topology: v6e:2x2x1
jax: 0.10.0
libtpu: 0.0.40
codegen_flags: <defaults>
</compile_context>

<pallas_src>
import functools

import jax
import jax.numpy as jnp
from jax.experimental import pallas as pl
from jax.experimental.pallas import tpu as pltpu


HIDDEN = 768
NUM_HEADS = 12
HEAD_DIM = HIDDEN // NUM_HEADS          # 64
HEAD_PAIRS = NUM_HEADS // 2             # 6 (2 heads per 128-lane column block)
FFN = 3072
NUM_LAYERS = 2
VOCAB = 128
NUM_CLASS = 11
CLS_PAD = 128          # pad the 11-wide head to a lane-dense 128-wide output
LN_EPS = 1e-12         # XLNet config layer_norm_eps


# ----------------------------------------------------------------------------
# shared epilogue helpers (traced inside kernels)
# ----------------------------------------------------------------------------
def _gelu(y):
    # tanh approximation of GELU
    return 0.5 * y * (
        1.0 + jnp.tanh(0.7978845608028654 * (y + 0.044715 * y * y * y))
    )


def _layernorm(y, gamma, beta, eps):
    # one-pass: sum and sum-of-squares (halves XLU reduction traffic)
    n = y.shape[-1]
    s1 = jnp.sum(y, axis=-1, keepdims=True)
    s2 = jnp.sum(y * y, axis=-1, keepdims=True)
    mu = s1 * (1.0 / n)
    var = s2 * (1.0 / n) - mu * mu
    return (y - mu) * jax.lax.rsqrt(var + eps) * gamma + beta


def _pick_tile(dim, target, base):
    """Largest multiple of `base` <= target that divides dim (or dim itself)."""
    if dim <= target:
        return dim
    t = (target // base) * base
    while t >= base:
        if dim % t == 0:
            return t
        t -= base
    return dim


# ----------------------------------------------------------------------------
# Fused tiled linear kernel:  y = epilogue(x @ w + b)
#   epilogue options: GELU, or residual-add + LayerNorm(gamma, beta)
# ----------------------------------------------------------------------------
def _linear_kernel_single(*refs, activation, fuse_ln, ln_eps):
    # single K step: no accumulator scratch, write the output tile directly
    if fuse_ln:
        x_ref, w_ref, b_ref, r_ref, g_ref, bb_ref, o_ref = refs
    else:
        x_ref, w_ref, b_ref, o_ref = refs
    y = jnp.dot(x_ref[...], w_ref[...],
                preferred_element_type=jnp.float32) + b_ref[...]
    if activation == "gelu":
        y = _gelu(y)
    if fuse_ln:
        y = y + r_ref[...].astype(jnp.float32)
        y = _layernorm(y, g_ref[...], bb_ref[...], ln_eps)
    o_ref[...] = y.astype(o_ref.dtype)


def _linear_kernel_multi(*refs, activation, fuse_ln, ln_eps):
    if fuse_ln:
        x_ref, w_ref, b_ref, r_ref, g_ref, bb_ref, o_ref, acc_ref = refs
    else:
        x_ref, w_ref, b_ref, o_ref, acc_ref = refs
    k = pl.program_id(2)

    @pl.when(k == 0)
    def _():
        acc_ref[...] = jnp.zeros_like(acc_ref)

    acc_ref[...] += jnp.dot(x_ref[...], w_ref[...],
                            preferred_element_type=jnp.float32)

    @pl.when(k == pl.num_programs(2) - 1)
    def _():
        y = acc_ref[...] + b_ref[...]
        if activation == "gelu":
            y = _gelu(y)
        if fuse_ln:
            y = y + r_ref[...].astype(jnp.float32)
            y = _layernorm(y, g_ref[...], bb_ref[...], ln_eps)
        o_ref[...] = y.astype(o_ref.dtype)


def linear(x, w, b, *, activation=None, residual=None, ln_gamma=None,
           ln_beta=None, out_dtype=jnp.bfloat16, ln_eps=LN_EPS):
    """y = epilogue(x @ w + b); x:(M,K) bf16, w:(K,N) bf16, b:(N,) f32."""
    M, K = x.shape
    Kw, N = w.shape
    assert K == Kw
    fuse_ln = residual is not None

    tm = _pick_tile(M, 512, 16)            # base 16: bf16 sublane packing
    tk = _pick_tile(K, 768, 128)
    # LayerNorm needs the whole row -> keep N un-tiled when LN is fused (N=768)
    tn = N if fuse_ln else _pick_tile(N, 1536, 128)
    kt = K // tk

    args = [x, w, b.reshape(1, N).astype(jnp.float32)]
    ln_args = []
    if fuse_ln:
        ln_args = [
            residual,
            ln_gamma.reshape(1, N).astype(jnp.float32),
            ln_beta.reshape(1, N).astype(jnp.float32),
        ]

    if kt == 1:
        grid = (M // tm, N // tn)
        in_specs = [
            pl.BlockSpec((tm, K), lambda i, j: (i, 0)),
            pl.BlockSpec((K, tn), lambda i, j: (0, j)),
            pl.BlockSpec((1, tn), lambda i, j: (0, j)),
        ]
        if fuse_ln:
            in_specs += [
                pl.BlockSpec((tm, tn), lambda i, j: (i, j)),
                pl.BlockSpec((1, tn), lambda i, j: (0, j)),
                pl.BlockSpec((1, tn), lambda i, j: (0, j)),
            ]
        kernel = functools.partial(_linear_kernel_single, activation=activation,
                                   fuse_ln=fuse_ln, ln_eps=ln_eps)
        out_specs = pl.BlockSpec((tm, tn), lambda i, j: (i, j))
        scratch = []
        dims = ("parallel", "parallel")
    else:
        grid = (M // tm, N // tn, kt)
        in_specs = [
            pl.BlockSpec((tm, tk), lambda i, j, k: (i, k)),
            pl.BlockSpec((tk, tn), lambda i, j, k: (k, j)),
            pl.BlockSpec((1, tn), lambda i, j, k: (0, j)),
        ]
        if fuse_ln:
            in_specs += [
                pl.BlockSpec((tm, tn), lambda i, j, k: (i, j)),
                pl.BlockSpec((1, tn), lambda i, j, k: (0, j)),
                pl.BlockSpec((1, tn), lambda i, j, k: (0, j)),
            ]
        kernel = functools.partial(_linear_kernel_multi, activation=activation,
                                   fuse_ln=fuse_ln, ln_eps=ln_eps)
        out_specs = pl.BlockSpec((tm, tn), lambda i, j, k: (i, j))
        scratch = [pltpu.VMEM((tm, tn), jnp.float32)]
        dims = ("parallel", "parallel", "arbitrary")

    return pl.pallas_call(
        kernel,
        out_shape=jax.ShapeDtypeStruct((M, N), out_dtype),
        grid_spec=pltpu.PrefetchScalarGridSpec(
            num_scalar_prefetch=0,
            grid=grid,
            in_specs=in_specs,
            out_specs=out_specs,
            scratch_shapes=scratch,
        ),
        compiler_params=pltpu.CompilerParams(dimension_semantics=dims),
    )(*args, *ln_args)


# ----------------------------------------------------------------------------
# Fused FFN block:  LayerNorm(x + W2 @ gelu(W1 @ x + b1) + b2)
#   grid = (M-tiles "parallel", FFN-tiles "arbitrary"); the (tm, 3072)
#   intermediate never leaves VMEM; x tile doubles as the residual.
# ----------------------------------------------------------------------------
def _ffn_kernel(x_ref, w1_ref, b1_ref, w2_ref, b2_ref, g_ref, bb_ref,
                o_ref, acc_ref, *, ln_eps):
    f = pl.program_id(1)

    @pl.when(f == 0)
    def _():
        acc_ref[...] = jnp.zeros_like(acc_ref)

    h = jnp.dot(x_ref[...], w1_ref[...],
                preferred_element_type=jnp.float32) + b1_ref[...]
    h = _gelu(h)
    acc_ref[...] += jnp.dot(h.astype(jnp.bfloat16), w2_ref[...],
                            preferred_element_type=jnp.float32)

    @pl.when(f == pl.num_programs(1) - 1)
    def _():
        y = acc_ref[...] + b2_ref[...] + x_ref[...].astype(jnp.float32)
        y = _layernorm(y, g_ref[...], bb_ref[...], ln_eps)
        o_ref[...] = y.astype(o_ref.dtype)


def ffn(x, w1, b1, w2, b2, *, ln_gamma, ln_beta, ln_eps=LN_EPS,
        out_dtype=jnp.bfloat16):
    M, K = x.shape                      # K = 768
    Kw, F = w1.shape                    # F = 3072
    assert K == Kw and w2.shape == (F, K)
    tm = _pick_tile(M, 256, 16)
    tf = _pick_tile(F, 1024, 128)
    grid = (M // tm, F // tf)

    return pl.pallas_call(
        functools.partial(_ffn_kernel, ln_eps=ln_eps),
        out_shape=jax.ShapeDtypeStruct((M, K), out_dtype),
        grid_spec=pltpu.PrefetchScalarGridSpec(
            num_scalar_prefetch=0,
            grid=grid,
            in_specs=[
                pl.BlockSpec((tm, K), lambda i, f: (i, 0)),   # x (also residual)
                pl.BlockSpec((K, tf), lambda i, f: (0, f)),   # W1 tile
                pl.BlockSpec((1, tf), lambda i, f: (0, f)),   # b1 tile
                pl.BlockSpec((tf, K), lambda i, f: (f, 0)),   # W2 tile
                pl.BlockSpec((1, K), lambda i, f: (0, 0)),    # b2
                pl.BlockSpec((1, K), lambda i, f: (0, 0)),    # ln gamma
                pl.BlockSpec((1, K), lambda i, f: (0, 0)),    # ln beta
            ],
            out_specs=pl.BlockSpec((tm, K), lambda i, f: (i, 0)),
            scratch_shapes=[pltpu.VMEM((tm, K), jnp.float32)],
        ),
        compiler_params=pltpu.CompilerParams(
            dimension_semantics=("parallel", "arbitrary")
        ),
    )(x, w1, b1.reshape(1, F).astype(jnp.float32), w2,
      b2.reshape(1, K).astype(jnp.float32),
      ln_gamma.reshape(1, K).astype(jnp.float32),
      ln_beta.reshape(1, K).astype(jnp.float32))


# ----------------------------------------------------------------------------
# Multi-head self-attention: grid (batch, head-pair, q-tile) -- all parallel.
# QKV stays in its packed (B, S, 2304) layout; each step reads lane-aligned
# 128-wide column blocks (2 heads) and writes a lane-dense (tq, 128) output
# slab.  No head split/merge transposes, no full (12, S, S) scores.
# ----------------------------------------------------------------------------
def _attention_kernel(q_ref, k_ref, v_ref, mask_ref, o_ref):
    q = q_ref[0]                                       # (tq, 128) bf16, 2 heads
    k = k_ref[0]                                       # (S, 128)
    v = v_ref[0]                                       # (S, 128)
    bias = (mask_ref[0].astype(jnp.float32) - 1.0) * 1e9   # (1, S)
    scale = 1.0 / float(HEAD_DIM) ** 0.5

    outs = []
    for h in range(2):                                 # unrolled: 2 heads/step
        sl = slice(h * HEAD_DIM, (h + 1) * HEAD_DIM)
        s = jax.lax.dot_general(
            q[:, sl], k[:, sl],
            dimension_numbers=(((1,), (1,)), ((), ())),
            preferred_element_type=jnp.float32)        # (tq, S)
        s = s * scale + bias
        m = jnp.max(s, axis=-1, keepdims=True)
        p = jnp.exp(s - m)
        denom = jnp.sum(p, axis=-1, keepdims=True)
        p = p * pl.reciprocal(denom, approx=True)
        outs.append(jnp.dot(p.astype(v.dtype), v[:, sl],
                            preferred_element_type=jnp.float32))   # (tq, 64)
    o_ref[0] = jnp.concatenate(outs, axis=-1).astype(o_ref.dtype)  # (tq, 128)


def attention(qkv, attention_mask):
    """qkv: (B, S, 3*HIDDEN) bf16, attention_mask: (B, S) -> (B, S, HIDDEN)."""
    B, S, _ = qkv.shape
    tq = _pick_tile(S, 256, 8)
    mask3 = attention_mask.astype(jnp.float32).reshape(B, 1, S)
    hp = HEAD_PAIRS                                    # 6 blocks of 128 cols

    return pl.pallas_call(
        _attention_kernel,
        out_shape=jax.ShapeDtypeStruct((B, S, HIDDEN), qkv.dtype),
        grid_spec=pltpu.PrefetchScalarGridSpec(
            num_scalar_prefetch=0,
            grid=(B, hp, S // tq),
            in_specs=[
                # Q pair: cols [h*128, h*128+128) of the Q block
                pl.BlockSpec((1, tq, 128), lambda b, h, qi: (b, qi, h)),
                # K pair: offset by HIDDEN -> block index hp + h
                pl.BlockSpec((1, S, 128), lambda b, h, qi: (b, 0, hp + h)),
                # V pair: offset by 2*HIDDEN -> block index 2*hp + h
                pl.BlockSpec((1, S, 128), lambda b, h, qi: (b, 0, 2 * hp + h)),
                pl.BlockSpec((1, 1, S), lambda b, h, qi: (b, 0, 0)),
            ],
            out_specs=pl.BlockSpec((1, tq, 128), lambda b, h, qi: (b, qi, h)),
        ),
        compiler_params=pltpu.CompilerParams(
            dimension_semantics=("parallel", "parallel", "parallel")
        ),
    )(qkv, qkv, qkv, mask3)


# ----------------------------------------------------------------------------
# Parameters (deterministic stand-in for the pretrained XLNet backbone)
# ----------------------------------------------------------------------------
def init_params(key):
    std = 0.02
    keys = iter(jax.random.split(key, 4 + NUM_LAYERS * 10))

    def nrm_bf16(k, shape):
        return (std * jax.random.normal(k, shape, dtype=jnp.float32)).astype(
            jnp.bfloat16
        )

    params = {"emb": nrm_bf16(next(keys), (VOCAB, HIDDEN)), "layers": []}
    for _ in range(NUM_LAYERS):
        params["layers"].append(
            {
                "w_qkv": nrm_bf16(next(keys), (HIDDEN, 3 * HIDDEN)),
                "b_qkv": jnp.zeros((3 * HIDDEN,), jnp.float32),
                "w_o": nrm_bf16(next(keys), (HIDDEN, HIDDEN)),
                "b_o": jnp.zeros((HIDDEN,), jnp.float32),
                "ln1_g": jnp.ones((HIDDEN,), jnp.float32),
                "ln1_b": jnp.zeros((HIDDEN,), jnp.float32),
                "w_ff1": nrm_bf16(next(keys), (HIDDEN, FFN)),
                "b_ff1": jnp.zeros((FFN,), jnp.float32),
                "w_ff2": nrm_bf16(next(keys), (FFN, HIDDEN)),
                "b_ff2": jnp.zeros((HIDDEN,), jnp.float32),
                "ln2_g": jnp.ones((HIDDEN,), jnp.float32),
                "ln2_b": jnp.zeros((HIDDEN,), jnp.float32),
            }
        )
    # classification head nn.Linear(768, num_class), zero-padded to 128 lanes
    w_cls = std * jax.random.normal(next(keys), (HIDDEN, NUM_CLASS),
                                    dtype=jnp.float32)
    w_cls_pad = jnp.zeros((HIDDEN, CLS_PAD), jnp.float32).at[:, :NUM_CLASS].set(
        w_cls
    )
    params["w_cls"] = w_cls_pad.astype(jnp.bfloat16)
    params["b_cls"] = jnp.zeros((CLS_PAD,), jnp.float32)
    return params


# ----------------------------------------------------------------------------
# Forward pass
# ----------------------------------------------------------------------------
def ner_model_forward(params, ids, attention_mask=None):
    B, S = ids.shape
    if attention_mask is None:
        attention_mask = jnp.ones((B, S), jnp.float32)

    # embedding lookup (glue, left to XLA gather)
    h2 = params["emb"][ids].reshape(B * S, HIDDEN)        # (B*S, 768) bf16

    for lp in params["layers"]:
        # --- self-attention block: QKV matmul -> fused attention -> O matmul
        #     with fused residual + LayerNorm epilogue ---
        qkv = linear(h2, lp["w_qkv"], lp["b_qkv"])        # (B*S, 2304) bf16
        attn = attention(qkv.reshape(B, S, 3 * HIDDEN), attention_mask)
        attn = attn.reshape(B * S, HIDDEN)
        h2 = linear(attn, lp["w_o"], lp["b_o"],
                    residual=h2, ln_gamma=lp["ln1_g"], ln_beta=lp["ln1_b"])

        # --- fused feed-forward block (GELU + residual + LN, one pallas_call,
        #     the (M, 3072) intermediate stays in VMEM) ---
        h2 = ffn(h2, lp["w_ff1"], lp["b_ff1"], lp["w_ff2"], lp["b_ff2"],
                 ln_gamma=lp["ln2_g"], ln_beta=lp["ln2_b"])

    # dropout(p=0.1) -> identity at inference
    # classification head: lane-dense 128-wide matmul, slice back to 11
    logits = linear(h2, params["w_cls"], params["b_cls"],
                    out_dtype=jnp.float32)                # (B*S, 128) f32
    return logits[:, :NUM_CLASS].reshape(B, S, NUM_CLASS)


if __name__ == "__main__":
    key = jax.random.PRNGKey(0)
    kp, ki = jax.random.split(key)

    B, S = 2, 16
    params = init_params(kp)
    ids = jax.random.randint(ki, (B, S), 0, VOCAB, dtype=jnp.int32)
    # first 12 tokens valid, rest padding
    attention_mask = jnp.broadcast_to(
        (jnp.arange(S) < 12).astype(jnp.float32), (B, S)
    )

    logits = ner_model_forward(params, ids, attention_mask)
    logits = jax.block_until_ready(logits)

    assert logits.shape == (B, S, NUM_CLASS)
    assert bool(jnp.all(jnp.isfinite(logits)))
    print("KERNEL_OK")
</pallas_src>

<mosaic_0001>
module attributes {stable_mosaic.version = 11 : i64} {
  func.func @_linear_kernel_single(%arg0: i32, %arg1: i32, %arg2: memref<32x768xbf16, #tpu.memory_space<vmem>>, %arg3: memref<768x1152xbf16, #tpu.memory_space<vmem>>, %arg4: memref<1x1152xf32, #tpu.memory_space<vmem>>, %arg5: memref<32x1152xbf16, #tpu.memory_space<vmem>>) attributes {dimension_semantics = [#tpu.dimension_semantics<parallel>, #tpu.dimension_semantics<parallel>], iteration_bounds = array<i64: 1, 2>, scalar_prefetch = 0 : i64, scratch_operands = 0 : i64, tpu.core_type = #tpu.core_type<tc>, window_params = [{transform_indices = @transform_0, window_bounds = array<i64: 32, 768>}, {transform_indices = @transform_1, window_bounds = array<i64: 768, 1152>}, {transform_indices = @transform_2, window_bounds = array<i64: 1, 1152>}, {transform_indices = @transform_3, window_bounds = array<i64: 32, 1152>}]} {
    %c0 = arith.constant 0 : index
    %c0_0 = arith.constant 0 : index
    %0 = vector.load %arg2[%c0, %c0_0] : memref<32x768xbf16, #tpu.memory_space<vmem>>, vector<32x768xbf16>
    %c0_1 = arith.constant 0 : index
    %c0_2 = arith.constant 0 : index
    %1 = vector.load %arg3[%c0_1, %c0_2] : memref<768x1152xbf16, #tpu.memory_space<vmem>>, vector<768x1152xbf16>
    %cst = arith.constant dense<0.000000e+00> : vector<32x1152xf32>
    %2 = tpu.matmul %0, %1, %cst {dimension_numbers = #tpu.dot_dimension_numbers<[1], [0], [0], [1], [0, 0, 1, 1], [], []>} : vector<32x768xbf16>, vector<768x1152xbf16>, vector<32x1152xf32> -> vector<32x1152xf32>
    %c0_3 = arith.constant 0 : index
    %c0_4 = arith.constant 0 : index
    %3 = vector.load %arg4[%c0_3, %c0_4] : memref<1x1152xf32, #tpu.memory_space<vmem>>, vector<1x1152xf32>
    %4 = vector.broadcast %3 : vector<1x1152xf32> to vector<32x1152xf32>
    %5 = arith.addf %2, %4 : vector<32x1152xf32>
    %6 = arith.truncf %5 : vector<32x1152xf32> to vector<32x1152xbf16>
    %c0_5 = arith.constant 0 : index
    %c0_6 = arith.constant 0 : index
    %7 = vector.load %arg5[%c0_5, %c0_6] : memref<32x1152xbf16, #tpu.memory_space<vmem>>, vector<32x1152xbf16>
    tpu.vector_store %arg5[%c0_5, %c0_6], %6 {strides = array<i32>} : memref<32x1152xbf16, #tpu.memory_space<vmem>>, vector<32x1152xbf16>,
    return
  }
  func.func @transform_0(%arg0: i32, %arg1: i32) -> (i32, i32) {
    %c0_i32 = arith.constant 0 : i32
    %c0_i32_0 = arith.constant 0 : i32
    return %arg0, %c0_i32 : i32, i32
  }
  func.func @transform_1(%arg0: i32, %arg1: i32) -> (i32, i32) {
    %c0_i32 = arith.constant 0 : i32
    %c0_i32_0 = arith.constant 0 : i32
    return %c0_i32, %arg1 : i32, i32
  }
  func.func @transform_2(%arg0: i32, %arg1: i32) -> (i32, i32) {
    %c0_i32 = arith.constant 0 : i32
    %c0_i32_0 = arith.constant 0 : i32
    return %c0_i32, %arg1 : i32, i32
  }
  func.func @transform_3(%arg0: i32, %arg1: i32) -> (i32, i32) {
    %c0_i32 = arith.constant 0 : i32
    return %arg0, %arg1 : i32, i32
  }
}

</mosaic_0001>

<bundles_post_ra>
// kernel: tpu_custom_call.1
= control target key start
LH: loop header
LB: loop body
LE: loop exit
PB: predicated region body
PF: predicated region fallthrough
CT: control target
= control target key end

     0   :  { %8 = vsyncpa [#allocation3], 0  ;;  %s6520_s0 = inlined_call_operand.hbm [shape: bf16[32,768], index: 0, kind: input, shape index: {}]   ;;  %s6521_s1 = inlined_call_operand.hbm [shape: bf16[768,2304], index: 1, kind: input, shape index: {}]   ;;  %s6522_s2 = inlined_call_operand.hbm [shape: f32[1,2304], index: 2, kind: input, shape index: {}]   ;;  %s6523_s3 = inlined_call_operand.hbm [shape: bf16[32,2304], index: 3, kind: output, shape index: {}]  }
   0x1   :  { %9 = vsyncpa [#allocation6], 0 }
   0x2   :  { %11 = vsyncpa [#allocation6 + $0x1], 0 }
   0x3   :  { %12 = vsyncpa [#allocation4], 0 }
   0x4   :  { %14 = vsyncpa [#allocation4 + $0x1], 0  ;;  %s5681_s12 = smov 0   ;;  %s5683_s13 = smov 0  }
   0x5   :  { %s5685_s14 = smov 0   ;;  %s5687_s15 = smov 0  }
   0x6   :  { %s5689_s16 = smov 0   ;;  %s5691_s17 = smov 0  }
   0x7 LB: > { %s29_s18 = sadd.s32 1, %s5643_s16  ;;  %s65_s19 = sadd.s32 1, %s5635_s14  ;;  %s5647_s17 = sphi %s5691_s17, %s20_s17   ;;  %s5643_s16 = sphi %s5689_s16, %s6543_s16   ;;  %s5639_s15 = sphi %s5687_s15, %s6542_s15   ;;  %s5635_s14 = sphi %s5685_s14, %s6541_s14   ;;  %s5631_s13 = sphi %s5683_s13, %s6540_s13   ;;  %s5627_s12 = sphi %s5681_s12, %s6539_s12  }
   0x8   : > { %p30_p0 = scmp.ge.s32.totalorder %s29_s18, 2  ;;  %p72_p1 = scmp.ne.s32.totalorder %s5635_s14, %s5631_s13 }
   0x9   : > { %p73_p2 = scmp.eq.s32.totalorder %s5647_s17, 0  ;;  %p4758_p5 = scmp.lt.s32.totalorder %s5647_s17, 2 }
   0xa   : > { %s6545_s18 = smov (%p30_p0, %s29_s18), 0  ;;  %s173_s21 = sand.u32 1, %s5647_s17  }
   0xb   : > { %p74_p4 = por %p73_p2, %p72_p1  ;;  %s62_s20 = ssub.s32 %s5643_s16, %s6545_s18 }
   0xc   : > { %p63_p6 = scmp.eq.s32.totalorder %s62_s20, 0  ;;  %s175_s22 = sand.u32 1, %s5635_s14  }
   0xd   : > { %s4604_s23 = smul.u32 576, %s5643_s16  ;;  %p5736_p7 = pnand %p4758_p5, %p74_p4 }
   0xe   : > { %s5729_s24 = scalar_select %p63_p6, %s5635_s14, %s65_s19  }
   0xf   : > { %s4727_s25 = smul.u32 3456, %s175_s22  ;;  %s183_s28 = scalar_lea.hbm %s6521_s1, %s4604_s23 }
  0x10   : > { %s5740_s5 = scalar_lea.sflag [#allocation6], %s173_s21  ;;  %p6525_p8 = pneg %p5736_p7 }
  0x11   : > { %s177_s30 = scalar_lea.vmem [#allocation5], %s4727_s25  ;;  %s5649_s7 = smov [#allocation5]  }
  0x12   : > { %s184_s4 = sshll.u32 %s177_s30, 4  ;;  %s5499_s8 = sshll.u32 %s5649_s7, 4  ;;  %s185_s4 = int_to_ptr.vmem [resolvable:$true] %s184_s4  ;;  %s5500_s8 = int_to_ptr.vmem [resolvable:$false] %s5499_s8 }
  0x13   : > { %s5494_s6 = scalar_lea.vmem %s185_s4, 55296  ;;  %s5501_s9 = scalar_lea.vmem %s5500_s8, 110592 }
  0x14   : > { %p5495_p9 = scmp.ne.s32.totalorder %s185_s4, %s5494_s6  ;;  %p5502_p12 = scmp.lt.s32.totalorder %s185_s4, %s5500_s8 }
  0x15   : > { %p5503_p13 = scmp.lt.s32.totalorder %s5501_s9, %s5494_s6 }
  0x16   : > { %p5497_p10 = pnand %p5495_p9, %p6525_p8 }
  0x17   : > { %p5504_p0 = por %p5503_p13, %p5502_p12 }
  0x18   : > { %p5498_p11 = pneg %p5497_p10 }
  0x1a   : > { %p5505_p2 = pnand %p5504_p0, %p5498_p11 }
  0x1c   : > { %5508 = shalt.err (!%p5505_p2)
}
  0x1d   : > { %s5650_s10 = smov 1152   ;;  %s5651_s11 = smov 576  }
  0x1e   : > { %s5652_s19 = smov 36   ;;  %s5751_s20 = sadd.s32 4294967295, %s5647_s17  }
  0x1f   : > { %4749 = dma.hbm_to_vmem [thread:$0]  (!%p5736_p7), %s183_s28, 55296, %s185_s4, %s5740_s5, %s5650_s10, %s5651_s11, %s5652_s19  }
  0x20   : > { %s4128_s21 = sadd.s32 4294967294, %s5647_s17   ;;  %p78_p4 = scmp.ne.s32.totalorder %s5631_s13, %s5627_s12 }
  0x21   : > { %p6524_p5 = scmp.eq.s32.totalorder %s5751_s20, 0  ;;  %p130_p6 = scmp.eq.s32.totalorder %s5751_s20, 1 }
  0x22   : > { %p136_p9 = scmp.eq.s32.totalorder %s4128_s21, 1  ;;  %p4129_p11 = scmp.ge.s32.totalorder %s5647_s17, 1 }
  0x23   : > { %p5760_p10 = por %p6524_p5, %p78_p4  ;;  %p5768_p12 = por %p130_p6, %p72_p1 }
  0x24   : > { %p5772_p13 = por %p136_p9, %p78_p4  ;;  %p143_p0 = scmp.lt.s32.totalorder %s5647_s17, 3 }
  0x25   : > { %s6529_s25 = scalar_select %p5768_p12, 1, 0 }
  0x26   : > { %s6530_s26 = scalar_select %p5772_p13, 1, 0 }
  0x27   : > { %p5777_p2 = pnand %p4129_p11, %p143_p0  ;;  %s5653_s28 = smov [#allocation2]  }
  0x28   : > { %s159_s30 = sshll.u32 %s5653_s28, 4  ;;  %s4728_s4 = smul.u32 9, %s175_s22  ;;  %s160_s30 = int_to_ptr.vmem [resolvable:$true] %s159_s30 }
  0x29   : > { %p4742_p3 = pneg %p5777_p2  ;;  %s4605_s6 = smul.u32 144, %s5643_s16 }
  0x2a   : > { %s198_s11 = scalar_lea.vmem [#allocation7], %s4728_s4  ;;  %s5520_s21 = scalar_lea.vmem %s160_s30, 1536 }
  0x2b   : > { %p5788_p1 = pnand %p4742_p3, %p6524_p5  ;;  %s5795_s10 = scalar_lea.hbm %s6522_s2, %s4605_s6 }
  0x2c   : > { %s206_s19 = sshll.u32 %s198_s11, 4  ;;  %p5521_p6 = scmp.ne.s32.totalorder %s160_s30, %s5520_s21  ;;  %s207_s19 = int_to_ptr.vmem [resolvable:$true] %s206_s19 }
  0x2d   : > { %p5511_p4 = pneg %p5788_p1  ;;  %p5528_p0 = scmp.lt.s32.totalorder %s160_s30, %s160_s30 }
  0x2e   : > { %p5529_p3 = scmp.lt.s32.totalorder %s5520_s21, %s5520_s21 }
  0x2f   : > { %p5523_p9 = pnand %p5521_p6, %p5511_p4 }
  0x30   : > { %p5530_p5 = por %p5529_p3, %p5528_p0 }
  0x31   : > { %p5524_p11 = pneg %p5523_p9 }
  0x33   : > { %p5531_p8 = pnand %p5530_p5, %p5524_p11 }
  0x35   : > { %5534 = shalt.err (!%p5531_p8)
}
  0x36   : > { %s5654_s22 = smov 384   ;;  %s5655_s28 = smov 24  }
  0x37   : > { %4745 = dma.hbm_to_vmem [thread:$0]  (!%p5788_p1), %s6520_s0, 1536, %s160_s30, [#allocation3], %s5654_s22, %s5654_s22, %s5655_s28  }
  0x38   : > { %s5548_s8 = scalar_lea.vmem %s207_s19, 144  ;;  %p6533_p12 = pneg %p5736_p7 }
  0x39   : > { %p5549_p13 = scmp.ne.s32.totalorder %s207_s19, %s5548_s8  ;;  %s5656_s9 = smov [#allocation7]  }
  0x3a   : > { %s5553_s11 = sshll.u32 %s5656_s9, 4  ;;  %s5554_s11 = int_to_ptr.vmem [resolvable:$false] %s5553_s11 }
  0x3b   : > { %p5551_p4 = pnand %p5549_p13, %p6533_p12  ;;  %s5555_s21 = scalar_lea.vmem %s5554_s11, 288 }
  0x3c   : > { %p5556_p8 = scmp.lt.s32.totalorder %s207_s19, %s5554_s11  ;;  %p5557_p5 = scmp.lt.s32.totalorder %s5555_s21, %s5548_s8 }
  0x3d   : > { %p5552_p6 = pneg %p5551_p4 }
  0x3e   : > { %p5558_p9 = por %p5557_p5, %p5556_p8 }
  0x40   : > { %p5559_p11 = pnand %p5558_p9, %p5552_p6 }
  0x42   : > { %5562 = shalt.err (!%p5559_p11)
}
  0x43   : > { %4752 = dma.hbm_to_vmem [thread:$0]  (!%p5736_p7), %s5795_s10, 144, %s207_s19, %s5740_s5  }
  0x44   : > { %215 = sbr.rel (%p5777_p2) target bundleno = 750 (0x2ee), region = 32  ;;  %p6534_p12 = scmp.eq.s32.totalorder (!%p5777_p2), %s5751_s20, 0 }
  0x49   : > { %5614 = dma.done.wait (%p6534_p12), [#allocation3], 1536   ;;  %p6535_p13 = pmov %p6534_p12 }
  0x4a   : > { %s221_s30 = sand.u32 1, %s5751_s20   ;;  %s5819_s7 = sand.u32 1, %s5631_s13  }
  0x4b   : > { %5616 = vsyncadd (%p6535_p13), [#allocation3], 4294965760  ;;  %s4729_s29 = smul.u32 3456, %s5819_s7  ;;  %s222_s22 = scalar_lea.sflag [#allocation6], %s221_s30 }
  0x4d   : > { %s5822_s28 = scalar_lea.vmem [#allocation5], %s4729_s29 }
  0x4e   : > { %5618 = dma.done.wait (%p5760_p10), %s222_s22, 55440  }
  0x4f   : > { %5620 = vsyncadd (%p5760_p10), %s222_s22, 4294911856  ;;  %v4818_v0 = vld [vmem:[%s5822_s28 + $0x1fc] ss:$36 sps:$4 sm:$0xff]   ;;  %v4824_v4 = vld [vmem:[%s5822_s28 + $0x1b4] ss:$36 sps:$4 sm:$0xff]   ;;  %s4730_s5 = smul.u32 9, %s5819_s7 }
  0x50   : > { %v4820_v1 = vld [vmem:[%s5822_s28 + $0x67c] ss:$36 sps:$4 sm:$0xff]   ;;  %3077 = vmatprep.subr.bf16.mxu0 %v4818_v0  ;;  %v4826_v5 = vld [vmem:[%s5822_s28 + $0x634] ss:$36 sps:$4 sm:$0xff]   ;;  %v4830_v8 = vld [vmem:[%s5822_s28 + $0x16c] ss:$36 sps:$4 sm:$0xff]  }
  0x51   : > { %v4822_v2 = vld [vmem:[%s5822_s28 + $0x1f8] ss:$36 sps:$4 sm:$0xff]   ;;  %3130 = vmatprep.subr.bf16.mxu1 %v4820_v1  ;;  %v4828_v6 = vld [vmem:[%s5822_s28 + $0x1b0] ss:$36 sps:$4 sm:$0xff]   ;;  %v4834_v10 = vld [vmem:[%s5822_s28 + $0x168] ss:$36 sps:$4 sm:$0xff]  }
  0x52   : > { %v4823_v3 = vld [vmem:[%s5822_s28 + $0x678] ss:$36 sps:$4 sm:$0xff]   ;;  %3078 = vmatpush1.bf16.msra.mxu0 %v4822_v2  ;;  %v4829_v7 = vld [vmem:[%s5822_s28 + $0x630] ss:$36 sps:$4 sm:$0xff]   ;;  %v4835_v11 = vld [vmem:[%s5822_s28 + $0x5e8] ss:$36 sps:$4 sm:$0xff]  }
  0x53   : > { %3131 = vmatpush1.bf16.msra.mxu1 %v4823_v3  ;;  %3079 = vmatprep.subr.bf16.mxu0 %v4824_v4  ;;  %v4832_v9 = vld [vmem:[%s5822_s28 + $0x5ec] ss:$36 sps:$4 sm:$0xff]   ;;  %v4836_v12 = vld [vmem:[%s5822_s28 + $0x124] ss:$36 sps:$4 sm:$0xff]   ;;  %v4842_v16 = vld [vmem:[%s5822_s28 + $0xdc] ss:$36 sps:$4 sm:$0xff]  }
  0x54   : > { %3132 = vmatprep.subr.bf16.mxu1 %v4826_v5  ;;  %v4838_v13 = vld [vmem:[%s5822_s28 + $0x5a4] ss:$36 sps:$4 sm:$0xff]   ;;  %v4844_v17 = vld [vmem:[%s5822_s28 + $0x55c] ss:$36 sps:$4 sm:$0xff]   ;;  %v4848_v20 = vld [vmem:[%s5822_s28 + $0x94] ss:$36 sps:$4 sm:$0xff]  }
  0x55   : > { %v4840_v14 = vld [vmem:[%s5822_s28 + $0x120] ss:$36 sps:$4 sm:$0xff]   ;;  %v4846_v18 = vld [vmem:[%s5822_s28 + $0xd8] ss:$36 sps:$4 sm:$0xff]   ;;  %v4852_v22 = vld [vmem:[%s5822_s28 + $0x90] ss:$36 sps:$4 sm:$0xff]  }
  0x56   : > { %3080 = vmatpush1.bf16.msra.mxu0 %v4828_v6  ;;  %v4841_v15 = vld [vmem:[%s5822_s28 + $0x5a0] ss:$36 sps:$4 sm:$0xff]   ;;  %v4847_v19 = vld [vmem:[%s5822_s28 + $0x558] ss:$36 sps:$4 sm:$0xff]   ;;  %v4853_v23 = vld [vmem:[%s5822_s28 + $0x510] ss:$36 sps:$4 sm:$0xff]  }
  0x57   : > { %3133 = vmatpush1.bf16.msra.mxu1 %v4829_v7  ;;  %3081 = vmatprep.subr.bf16.mxu0 %v4830_v8  ;;  %v4850_v21 = vld [vmem:[%s5822_s28 + $0x514] ss:$36 sps:$4 sm:$0xff]   ;;  %v4854_v24 = vld [vmem:[%s5822_s28 + $0x4c] ss:$36 sps:$4 sm:$0xff]   ;;  %v4860_v28 = vld [vmem:[%s5822_s28 + $0x4] ss:$36 sps:$4 sm:$0xff]  }
  0x58   : > { %3134 = vmatprep.subr.bf16.mxu1 %v4832_v9  ;;  %v4856_v25 = vld [vmem:[%s5822_s28 + $0x4cc] ss:$36 sps:$4 sm:$0xff]   ;;  %v4862_v29 = vld [vmem:[%s5822_s28 + $0x484] ss:$36 sps:$4 sm:$0xff]   ;;  %v4866_v32 = vld [vmem:[%s5822_s28 + $0x43c] ss:$36 sps:$4 sm:$0xff]  }
  0x59   : > { %v4858_v26 = vld [vmem:[%s5822_s28 + $0x48] ss:$36 sps:$4 sm:$0xff]   ;;  %v4864_v30 = vld [vmem:[%s5822_s28] ss:$36 sps:$4 sm:$0xff]   ;;  %v4870_v34 = vld [vmem:[%s5822_s28 + $0x438] ss:$36 sps:$4 sm:$0xff]  }
  0x5a   : > { %3082 = vmatpush1.bf16.msra.mxu0 %v4834_v10  ;;  %v4859_v27 = vld [vmem:[%s5822_s28 + $0x4c8] ss:$36 sps:$4 sm:$0xff]   ;;  %v4865_v31 = vld [vmem:[%s5822_s28 + $0x480] ss:$36 sps:$4 sm:$0xff]   ;;  %v4871_v35 = vld [vmem:[%s5822_s28 + $0x8b8] ss:$36 sps:$4 sm:$0xff]  }
  0x5b   : > { %3135 = vmatpush1.bf16.msra.mxu1 %v4835_v11  ;;  %3083 = vmatprep.subr.bf16.mxu0 %v4836_v12  ;;  %v4868_v33 = vld [vmem:[%s5822_s28 + $0x8bc] ss:$36 sps:$4 sm:$0xff]   ;;  %v4872_v36 = vld [vmem:[%s5822_s28 + $0x3f4] ss:$36 sps:$4 sm:$0xff]   ;;  %v4878_v40 = vld [vmem:[%s5822_s28 + $0x3ac] ss:$36 sps:$4 sm:$0xff]  }
  0x5c   : > { %3136 = vmatprep.subr.bf16.mxu1 %v4838_v13  ;;  %v4874_v37 = vld [vmem:[%s5822_s28 + $0x874] ss:$36 sps:$4 sm:$0xff]   ;;  %v4880_v41 = vld [vmem:[%s5822_s28 + $0x82c] ss:$36 sps:$4 sm:$0xff]   ;;  %v4884_v44 = vld [vmem:[%s5822_s28 + $0x364] ss:$36 sps:$4 sm:$0xff]  }
  0x5d   : > { %v4876_v38 = vld [vmem:[%s5822_s28 + $0x3f0] ss:$36 sps:$4 sm:$0xff]   ;;  %v4882_v42 = vld [vmem:[%s5822_s28 + $0x3a8] ss:$36 sps:$4 sm:$0xff]   ;;  %v4888_v46 = vld [vmem:[%s5822_s28 + $0x360] ss:$36 sps:$4 sm:$0xff]  }
  0x5e   : > { %3084 = vmatpush1.bf16.msra.mxu0 %v4840_v14  ;;  %v4877_v39 = vld [vmem:[%s5822_s28 + $0x870] ss:$36 sps:$4 sm:$0xff]   ;;  %v4883_v43 = vld [vmem:[%s5822_s28 + $0x828] ss:$36 sps:$4 sm:$0xff]   ;;  %v4889_v47 = vld [vmem:[%s5822_s28 + $0x7e0] ss:$36 sps:$4 sm:$0xff]  }
  0x5f   : > { %3137 = vmatpush1.bf16.msra.mxu1 %v4841_v15  ;;  %3085 = vmatprep.subr.bf16.mxu0 %v4842_v16  ;;  %v4886_v45 = vld [vmem:[%s5822_s28 + $0x7e4] ss:$36 sps:$4 sm:$0xff]   ;;  %v4890_v49 = vld [vmem:[%s5822_s28 + $0x31c] ss:$36 sps:$4 sm:$0xff]   ;;  %v4896_v54 = vld [vmem:[%s5822_s28 + $0x2d4] ss:$36 sps:$4 sm:$0xff]  }
  0x60   : > { %3138 = vmatprep.subr.bf16.mxu1 %v4844_v17  ;;  %v5876_v48 = vld [vmem:[#allocation2 + $0x4] ss:$24 sps:$4 sm:$0xff]   ;;  %v4898_v55 = vld [vmem:[%s5822_s28 + $0x754] ss:$36 sps:$4 sm:$0xff]   ;;  %v4902_v58 = vld [vmem:[%s5822_s28 + $0x28c] ss:$36 sps:$4 sm:$0xff]  }
  0x61   : > { %v5879_v50 = vld [vmem:[#allocation2 + $0xc] ss:$24 sps:$4 sm:$0xff]   ;;  %v4892_v51 = vld [vmem:[%s5822_s28 + $0x79c] ss:$36 sps:$4 sm:$0xff]   ;;  %3109 = vmatprep.mubr.bf16.mxu0 %v5876_v48  ;;  %v4900_v56 = vld [vmem:[%s5822_s28 + $0x2d0] ss:$36 sps:$4 sm:$0xff]  }
  0x62   : > { %3086 = vmatpush1.bf16.msra.mxu0 %v4846_v18  ;;  %3162 = vmatprep.mubr.bf16.mxu1 %v5879_v50  ;;  %v4894_v52 = vld [vmem:[%s5822_s28 + $0x318] ss:$36 sps:$4 sm:$0xff]   ;;  %v4901_v57 = vld [vmem:[%s5822_s28 + $0x750] ss:$36 sps:$4 sm:$0xff]   ;;  %v4906_v60 = vld [vmem:[%s5822_s28 + $0x288] ss:$36 sps:$4 sm:$0xff]  }
  0x63   : > { %3139 = vmatpush1.bf16.msra.mxu1 %v4847_v19  ;;  %3087 = vmatprep.subr.bf16.mxu0 %v4848_v20  ;;  %v4895_v53 = vld [vmem:[%s5822_s28 + $0x798] ss:$36 sps:$4 sm:$0xff]   ;;  %v4904_v59 = vld [vmem:[%s5822_s28 + $0x70c] ss:$36 sps:$4 sm:$0xff]   ;;  %v4908_v62 = vld [vmem:[%s5822_s28 + $0x244] ss:$36 sps:$4 sm:$0xff]  }
  0x64   : > { %3140 = vmatprep.subr.bf16.mxu1 %v4850_v21  ;;  %v4907_v61 = vld [vmem:[%s5822_s28 + $0x708] ss:$36 sps:$4 sm:$0xff]   ;;  %v4912_v0 = vld [vmem:[%s5822_s28 + $0x240] ss:$36 sps:$4 sm:$0xff]   ;;  %v4920_v6 = vld [vmem:[%s5822_s28 + $0xaf8] ss:$36 sps:$4 sm:$0xff]  }
  0x65   : > { %v4910_v63 = vld [vmem:[%s5822_s28 + $0x6c4] ss:$36 sps:$4 sm:$0xff]   ;;  %v4922_v2 = vld [vmem:[%s5822_s28 + $0xafc] ss:$36 sps:$4 sm:$0xff]   ;;  %v4928_v8 = vld [vmem:[%s5822_s28 + $0xab4] ss:$36 sps:$4 sm:$0xff]  }
  0x66   : > { %3088 = vmatpush1.bf16.msra.mxu0 %v4852_v22  ;;  %v4913_v1 = vld [vmem:[%s5822_s28 + $0x6c0] ss:$36 sps:$4 sm:$0xff]   ;;  %v4926_v10 = vld [vmem:[%s5822_s28 + $0xab0] ss:$36 sps:$4 sm:$0xff]   ;;  %v4929_v11 = vld [vmem:[%s5822_s28 + $0x1b8] ss:$36 sps:$4 sm:$0xff]  }
  0x67   : > { %3141 = vmatpush1.bf16.msra.mxu1 %v4853_v23  ;;  %3089 = vmatprep.subr.bf16.mxu0 %v4854_v24  ;;  %v4925_v3 = vld [vmem:[%s5822_s28 + $0x204] ss:$36 sps:$4 sm:$0xff]   ;;  %v5900_v4 = vld [vmem:[#allocation2] ss:$24 sps:$4 sm:$0xff]   ;;  %v4934_v12 = vld [vmem:[%s5822_s28 + $0xa6c] ss:$36 sps:$4 sm:$0xff]  }
  0x68   : > { %3142 = vmatprep.subr.bf16.mxu1 %v4856_v25  ;;  %v5902_v5 = vld [vmem:[#allocation2 + $0x8] ss:$24 sps:$4 sm:$0xff]   ;;  %v4937_v13 = vld [vmem:[%s5822_s28 + $0x174] ss:$36 sps:$4 sm:$0xff]   ;;  %v4943_v17 = vld [vmem:[%s5822_s28 + $0x12c] ss:$36 sps:$4 sm:$0xff]  }
  0x69   : > { %v4923_v7 = vld [vmem:[%s5822_s28 + $0x200] ss:$36 sps:$4 sm:$0xff]   ;;  %v4932_v14 = vld [vmem:[%s5822_s28 + $0xa68] ss:$36 sps:$4 sm:$0xff]   ;;  %v4935_v15 = vld [vmem:[%s5822_s28 + $0x170] ss:$36 sps:$4 sm:$0xff]  }
  0x6a   : > { %3090 = vmatpush1.bf16.msra.mxu0 %v4858_v26  ;;  %v4931_v9 = vld [vmem:[%s5822_s28 + $0x1bc] ss:$36 sps:$4 sm:$0xff]   ;;  %v4940_v16 = vld [vmem:[%s5822_s28 + $0xa24] ss:$36 sps:$4 sm:$0xff]   ;;  %v5922_v22 = vld [vmem:[#allocation2 + $0x34] ss:$24 sps:$4 sm:$0xff]  }
  0x6b   : > { %3143 = vmatpush1.bf16.msra.mxu1 %v4859_v27  ;;  %3091 = vmatprep.subr.bf16.mxu0 %v4860_v28  ;;  %v4938_v18 = vld [vmem:[%s5822_s28 + $0xa20] ss:$36 sps:$4 sm:$0xff]   ;;  %v4941_v19 = vld [vmem:[%s5822_s28 + $0x128] ss:$36 sps:$4 sm:$0xff]   ;;  %v4944_v23 = vld [vmem:[%s5822_s28 + $0x9d8] ss:$36 sps:$4 sm:$0xff]  }
  0x6c   : > { %3144 = vmatprep.subr.bf16.mxu1 %v4862_v29  ;;  %v4946_v20 = vld [vmem:[%s5822_s28 + $0x9dc] ss:$36 sps:$4 sm:$0xff]   ;;  %v4949_v21 = vld [vmem:[%s5822_s28 + $0xe4] ss:$36 sps:$4 sm:$0xff]   ;;  %v4952_v25 = vld [vmem:[%s5822_s28 + $0x994] ss:$36 sps:$4 sm:$0xff]  }
  0x6d   : > { %v4947_v24 = vld [vmem:[%s5822_s28 + $0xe0] ss:$36 sps:$4 sm:$0xff]   ;;  %v5928_v27 = vld [vmem:[#allocation2 + $0x30] ss:$24 sps:$4 sm:$0xff]   ;;  %v5932_v29 = vld [vmem:[#allocation2 + $0x3c] ss:$24 sps:$4 sm:$0xff]  }
  0x6e   : > { %3092 = vmatpush1.bf16.msra.mxu0 %v4864_v30  ;;  %v4955_v26 = vld [vmem:[%s5822_s28 + $0x9c] ss:$36 sps:$4 sm:$0xff]   ;;  %v4950_v28 = vld [vmem:[%s5822_s28 + $0x990] ss:$36 sps:$4 sm:$0xff]   ;;  %s6231_s20 = scalar_lea.vmem [#allocation7], %s4730_s5  ;;  %s4731_s23 = smul.u32 144, %s5819_s7 }
  0x6f   : > { %3145 = vmatpush1.bf16.msra.mxu1 %v4865_v31  ;;  %3093 = vmatprep.subr.bf16.mxu0 %v4866_v32  ;;  %v4953_v30 = vld [vmem:[%s5822_s28 + $0x98] ss:$36 sps:$4 sm:$0xff]   ;;  %v4958_v32 = vld [vmem:[%s5822_s28 + $0x94c] ss:$36 sps:$4 sm:$0xff]   ;;  %s4626_s10 = smul.u32 576, %s5639_s15  ;;  %s3993_s8 = scalar_lea.sflag [#allocation4], %s5819_s7 }
  0x70   : > { %3146 = vmatprep.subr.bf16.mxu1 %v4868_v33  ;;  %v5936_v31 = vld [vmem:[#allocation2 + $0x38] ss:$24 sps:$4 sm:$0xff]   ;;  %s6281_s27 = scalar_lea.vmem [#allocation8], %s4731_s23  ;;  %p6536_p10 = scmp.ne.s32.totalorder %s6529_s25, 0 }
  0x71   : > { %v4961_v33 = vld [vmem:[%s5822_s28 + $0x54] ss:$36 sps:$4 sm:$0xff]   ;;  %s4009_s19 = sshll.u32 %s6281_s27, 4  ;;  %s6468_s15 = scalar_lea.hbm %s6523_s3, %s4626_s10  ;;  %s6470_s19 = int_to_ptr.vmem [resolvable:$true] %s4009_s19 }
  0x72   : > { %3094 = vmatpush2.bf16.msra.mxu0 %v4870_v34  ;;  %v4956_v34 = vld [vmem:[%s5822_s28 + $0x948] ss:$36 sps:$4 sm:$0xff]   ;;  %s5563_s9 = scalar_lea.vmem %s6470_s19, 2304  ;;  %s5657_s11 = smov [#allocation8]  }
  0x73   : > { %3147 = vmatpush2.bf16.msra.mxu1 %v4871_v35  ;;  %3095 = vmatprep.subr.bf16.mxu0 %v4872_v36  ;;  %v4959_v35 = vld [vmem:[%s5822_s28 + $0x50] ss:$36 sps:$4 sm:$0xff]   ;;  %v4964_v36 = vld [vmem:[%s5822_s28 + $0x904] ss:$36 sps:$4 sm:$0xff]   ;;  %p5564_p7 = scmp.ne.s32.totalorder %s6470_s19, %s5563_s9  ;;  %s5567_s21 = sshll.u32 %s5657_s11, 4  ;;  %s5568_s21 = int_to_ptr.vmem [resolvable:$false] %s5567_s21 }
  0x74   : > { %3148 = vmatprep.subr.bf16.mxu1 %v4874_v37  ;;  %v4967_v37 = vld [vmem:[%s5822_s28 + $0xc] ss:$36 sps:$4 sm:$0xff]   ;;  %s5569_s30 = scalar_lea.vmem %s5568_s21, 4608  ;;  %p5570_p0 = scmp.lt.s32.totalorder %s6470_s19, %s5568_s21 }
  0x75   : > { %p5565_p2 = pnand %p5564_p7, %p6536_p10  ;;  %p5571_p3 = scmp.lt.s32.totalorder %s5569_s30, %s5563_s9 }
  0x76   : > { %3096 = vmatpush2.bf16.msra.mxu0 %v4876_v38  ;;  %v4962_v38 = vld [vmem:[%s5822_s28 + $0x900] ss:$36 sps:$4 sm:$0xff]  }
  0x77   : > { %3149 = vmatpush2.bf16.msra.mxu1 %v4877_v39  ;;  %3097 = vmatprep.subr.bf16.mxu0 %v4878_v40  ;;  %v4965_v39 = vld [vmem:[%s5822_s28 + $0x8] ss:$36 sps:$4 sm:$0xff]   ;;  %p5566_p1 = pneg %p5565_p2  ;;  %p5572_p4 = por %p5571_p3, %p5570_p0 }
  0x78   : > { %3150 = vmatprep.subr.bf16.mxu1 %v4880_v41  ;;  %v5949_v40 = vld [vmem:[#allocation2 + $0x14] ss:$24 sps:$4 sm:$0xff]   ;;  %v4970_v41 = vld [vmem:[%s5822_s28 + $0xd3c] ss:$36 sps:$4 sm:$0xff]  }
  0x79   : > { %p5573_p6 = pnand %p5572_p4, %p5566_p1 }
  0x7a   : > { %3098 = vmatpush2.bf16.msra.mxu0 %v4882_v42  ;;  %v4973_v42 = vld [vmem:[%s5822_s28 + $0x444] ss:$36 sps:$4 sm:$0xff]  }
  0x7b   : > { %3151 = vmatpush2.bf16.msra.mxu1 %v4883_v43  ;;  %3099 = vmatprep.subr.bf16.mxu0 %v4884_v44  ;;  %v4968_v43 = vld [vmem:[%s5822_s28 + $0xd38] ss:$36 sps:$4 sm:$0xff]   ;;  %v4971_v44 = vld [vmem:[%s5822_s28 + $0x440] ss:$36 sps:$4 sm:$0xff]  }
  0x7c   : > { %3152 = vmatprep.subr.bf16.mxu1 %v4886_v45  ;;  %v4976_v45 = vld [vmem:[%s5822_s28 + $0xcf4] ss:$36 sps:$4 sm:$0xff]  }
  0x7e   : > { %3100 = vmatpush2.bf16.msra.mxu0 %v4888_v46  ;;  %v4979_v46 = vld [vmem:[%s5822_s28 + $0x3fc] ss:$36 sps:$4 sm:$0xff]  }
  0x7f   : > { %3153 = vmatpush2.bf16.msra.mxu1 %v4889_v47  ;;  %3101 = vmatprep.subr.bf16.mxu0 %v4890_v49  ;;  %v4974_v47 = vld [vmem:[%s5822_s28 + $0xcf0] ss:$36 sps:$4 sm:$0xff]  }
  0x80   : > { %3154 = vmatprep.subr.bf16.mxu1 %v4892_v51  ;;  %v4982_v49 = vld [vmem:[%s5822_s28 + $0xcac] ss:$36 sps:$4 sm:$0xff]   ;;  %v4985_v51 = vld [vmem:[%s5822_s28 + $0x3b4] ss:$36 sps:$4 sm:$0xff]  }
  0x82   : > { %3102 = vmatpush2.bf16.msra.mxu0 %v4894_v52  ;;  %v4980_v52 = vld [vmem:[%s5822_s28 + $0xca8] ss:$36 sps:$4 sm:$0xff]  }
  0x83   : > { %3155 = vmatpush2.bf16.msra.mxu1 %v4895_v53  ;;  %3103 = vmatprep.subr.bf16.mxu0 %v4896_v54  ;;  %v4983_v53 = vld [vmem:[%s5822_s28 + $0x3b0] ss:$36 sps:$4 sm:$0xff]   ;;  %v4988_v54 = vld [vmem:[%s5822_s28 + $0xc64] ss:$36 sps:$4 sm:$0xff]  }
  0x84   : > { %3156 = vmatprep.subr.bf16.mxu1 %v4898_v55  ;;  %v4991_v55 = vld [vmem:[%s5822_s28 + $0x36c] ss:$36 sps:$4 sm:$0xff]  }
  0x86   : > { %3104 = vmatpush2.bf16.msra.mxu0 %v4900_v56  ;;  %v4986_v56 = vld [vmem:[%s5822_s28 + $0xc60] ss:$36 sps:$4 sm:$0xff]  }
  0x87   : > { %3157 = vmatpush2.bf16.msra.mxu1 %v4901_v57  ;;  %3105 = vmatprep.subr.bf16.mxu0 %v4902_v58  ;;  %v4989_v57 = vld [vmem:[%s5822_s28 + $0x368] ss:$36 sps:$4 sm:$0xff]   ;;  %v4996_v58 = vld [vmem:[%s5822_s28 + $0xc1c] ss:$36 sps:$4 sm:$0xff]  }
  0x88   : > { %3158 = vmatprep.subr.bf16.mxu1 %v4904_v59  ;;  %v4999_v59 = vld [vmem:[%s5822_s28 + $0x324] ss:$36 sps:$4 sm:$0xff]  }
  0x8a   : > { %3106 = vmatpush2.bf16.msra.mxu0 %v4906_v60  ;;  %v4994_v60 = vld [vmem:[%s5822_s28 + $0xc18] ss:$36 sps:$4 sm:$0xff]  }
  0x8b   : > { %3159 = vmatpush2.bf16.msra.mxu1 %v4907_v61  ;;  %3107 = vmatprep.subr.bf16.mxu0 %v4908_v62  ;;  %v4997_v61 = vld [vmem:[%s5822_s28 + $0x320] ss:$36 sps:$4 sm:$0xff]   ;;  %v5006_v62 = vld [vmem:[%s5822_s28 + $0xbd4] ss:$36 sps:$4 sm:$0xff]  }
  0x8c   : > { %3160 = vmatprep.subr.bf16.mxu1 %v4910_v63  ;;  %v5009_v63 = vld [vmem:[%s5822_s28 + $0x2dc] ss:$36 sps:$4 sm:$0xff]  }
  0x8e   : > { %3108 = vmatpush2.bf16.msra.mxu0 %v4912_v0  ;;  %v5004_v0 = vld [vmem:[%s5822_s28 + $0xbd0] ss:$36 sps:$4 sm:$0xff]  }
  0x8f   : > { %3161 = vmatpush2.bf16.msra.mxu1 %v4913_v1  ;;  %3183 = vmatprep.subr.bf16.mxu0 %v4922_v2  ;;  %v5007_v1 = vld [vmem:[%s5822_s28 + $0x2d8] ss:$36 sps:$4 sm:$0xff]   ;;  %v5012_v2 = vld [vmem:[%s5822_s28 + $0xb8c] ss:$36 sps:$4 sm:$0xff]  }
  0x90   : > { %3236 = vmatprep.subr.bf16.mxu1 %v4925_v3  ;;  %v5015_v3 = vld [vmem:[%s5822_s28 + $0x294] ss:$36 sps:$4 sm:$0xff]  }
  0x91   : > { %3110 = vmatmul.mubr.bf16.vlgmr.msra.gmra.mxu0 %v5900_v4 }
  0x92   : > { %3163 = vmatmul.mubr.bf16.vlgmr.msra.gmra.mxu1 %v5902_v5  ;;  %3184 = vmatpush1.bf16.msra.mxu0 %v4920_v6  ;;  %v5010_v6 = vld [vmem:[%s5822_s28 + $0xb88] ss:$36 sps:$4 sm:$0xff]  }
  0x93   : > { %3237 = vmatpush1.bf16.msra.mxu1 %v4923_v7  ;;  %3185 = vmatprep.subr.bf16.mxu0 %v4928_v8  ;;  %v5013_v7 = vld [vmem:[%s5822_s28 + $0x290] ss:$36 sps:$4 sm:$0xff]   ;;  %v5018_v8 = vld [vmem:[%s5822_s28 + $0xb44] ss:$36 sps:$4 sm:$0xff]  }
  0x94   : > { %3238 = vmatprep.subr.bf16.mxu1 %v4931_v9  ;;  %3119 = vmatprep.mubr.bf16.mxu0 %v5922_v22  ;;  %v5021_v9 = vld [vmem:[%s5822_s28 + $0x24c] ss:$36 sps:$4 sm:$0xff]  }
  0x95   : > { %3172 = vmatprep.mubr.bf16.mxu1 %v5932_v29 }
  0x96   : > { %3186 = vmatpush1.bf16.msra.mxu0 %v4926_v10  ;;  %v5016_v10 = vld [vmem:[%s5822_s28 + $0xb40] ss:$36 sps:$4 sm:$0xff]  }
  0x97   : > { %3239 = vmatpush1.bf16.msra.mxu1 %v4929_v11  ;;  %3187 = vmatprep.subr.bf16.mxu0 %v4934_v12  ;;  %v5019_v11 = vld [vmem:[%s5822_s28 + $0x248] ss:$36 sps:$4 sm:$0xff]  }
  0x98   : > { %3240 = vmatprep.subr.bf16.mxu1 %v4937_v13  ;;  %v5027_v12 = vld [vmem:[%s5822_s28 + $0x684] ss:$36 sps:$4 sm:$0xff]  }
  0x99   : > { %3120 = vmatmul.mubr.bf16.gmra.mxu0 %v5928_v27  ;;  %v5030_v13 = vld [vmem:[%s5822_s28 + $0xb04] ss:$36 sps:$4 sm:$0xff]  }
  0x9a   : > { %3188 = vmatpush1.bf16.msra.mxu0 %v4932_v14  ;;  %3173 = vmatmul.mubr.bf16.gmra.mxu1 %v5936_v31  ;;  %v5986_v14 = vld [vmem:[#allocation2 + $0x10] ss:$24 sps:$4 sm:$0xff]  }
  0x9b   : > { %3241 = vmatpush1.bf16.msra.mxu1 %v4935_v15  ;;  %3189 = vmatprep.subr.bf16.mxu0 %v4940_v16  ;;  %v5025_v15 = vld [vmem:[%s5822_s28 + $0x680] ss:$36 sps:$4 sm:$0xff]  }
  0x9c   : > { %3242 = vmatprep.subr.bf16.mxu1 %v4943_v17  ;;  %3268 = vmatprep.mubr.bf16.mxu1 %v5876_v48  ;;  %v4977_v48 = vld [vmem:[%s5822_s28 + $0x3f8] ss:$36 sps:$4 sm:$0xff]   ;;  %v5028_v16 = vld [vmem:[%s5822_s28 + $0xb00] ss:$36 sps:$4 sm:$0xff]  }
  0x9d   : > { %3215 = vmatprep.mubr.bf16.mxu0 %v5949_v40  ;;  %v5033_v17 = vld [vmem:[%s5822_s28 + $0x63c] ss:$36 sps:$4 sm:$0xff]  }
  0x9e   : > { %3190 = vmatpush1.bf16.msra.mxu0 %v4938_v18  ;;  %v5036_v18 = vld [vmem:[%s5822_s28 + $0xabc] ss:$36 sps:$4 sm:$0xff]  }
  0x9f   : > { %3243 = vmatpush1.bf16.msra.mxu1 %v4941_v19  ;;  %3191 = vmatprep.subr.bf16.mxu0 %v4946_v20  ;;  %v5992_v19 = vld [vmem:[#allocation2 + $0x44] ss:$24 sps:$4 sm:$0xff]  }
  0xa0   : > { %3244 = vmatprep.subr.bf16.mxu1 %v4949_v21  ;;  %v5031_v20 = vld [vmem:[%s5822_s28 + $0x638] ss:$36 sps:$4 sm:$0xff]  }
  0xa1   : > { %v5034_v21 = vld [vmem:[%s5822_s28 + $0xab8] ss:$36 sps:$4 sm:$0xff]  }
  0xa2   : > { %3192 = vmatpush1.bf16.msra.mxu0 %v4944_v23  ;;  %v5042_v23 = vld [vmem:[%s5822_s28 + $0x5f4] ss:$36 sps:$4 sm:$0xff]  }
  0xa3   : > { %3245 = vmatpush1.bf16.msra.mxu1 %v4947_v24  ;;  %3193 = vmatprep.subr.bf16.mxu0 %v4952_v25  ;;  %v5045_v24 = vld [vmem:[%s5822_s28 + $0xa74] ss:$36 sps:$4 sm:$0xff]  }
  0xa4   : > { %3246 = vmatprep.subr.bf16.mxu1 %v4955_v26  ;;  %v6001_v25 = vld [vmem:[#allocation2 + $0x40] ss:$24 sps:$4 sm:$0xff]   ;;  %v5043_v26 = vld [vmem:[%s5822_s28 + $0xa70] ss:$36 sps:$4 sm:$0xff]  }
  0xa6   : > { %3194 = vmatpush1.bf16.msra.mxu0 %v4950_v28  ;;  %v5048_v28 = vld [vmem:[%s5822_s28 + $0x5ac] ss:$36 sps:$4 sm:$0xff]  }
  0xa7   : > { %3247 = vmatpush1.bf16.msra.mxu1 %v4953_v30  ;;  %3195 = vmatprep.subr.bf16.mxu0 %v4958_v32  ;;  %v5051_v30 = vld [vmem:[%s5822_s28 + $0xa2c] ss:$36 sps:$4 sm:$0xff]  }
  0xa8   : > { %3248 = vmatprep.subr.bf16.mxu1 %v4961_v33  ;;  %v5046_v32 = vld [vmem:[%s5822_s28 + $0x5a8] ss:$36 sps:$4 sm:$0xff]  }
  0xa9   : > { %v5049_v33 = vld [vmem:[%s5822_s28 + $0xa28] ss:$36 sps:$4 sm:$0xff]  }
  0xaa   : > { %3196 = vmatpush1.bf16.msra.mxu0 %v4956_v34  ;;  %v5057_v34 = vld [vmem:[%s5822_s28 + $0x9e4] ss:$36 sps:$4 sm:$0xff]  }
  0xab   : > { %3249 = vmatpush1.bf16.msra.mxu1 %v4959_v35  ;;  %3197 = vmatprep.subr.bf16.mxu0 %v4964_v36  ;;  %v5052_v35 = vld [vmem:[%s5822_s28 + $0x560] ss:$36 sps:$4 sm:$0xff]  }
  0xac   : > { %3250 = vmatprep.subr.bf16.mxu1 %v4967_v37  ;;  %v5055_v36 = vld [vmem:[%s5822_s28 + $0x9e0] ss:$36 sps:$4 sm:$0xff]  }
  0xad   : > { %v5063_v37 = vld [vmem:[%s5822_s28 + $0x99c] ss:$36 sps:$4 sm:$0xff]  }
  0xae   : > { %3198 = vmatpush1.bf16.msra.mxu0 %v4962_v38  ;;  %v5058_v38 = vld [vmem:[%s5822_s28 + $0x518] ss:$36 sps:$4 sm:$0xff]  }
  0xaf   : > { %3251 = vmatpush1.bf16.msra.mxu1 %v4965_v39  ;;  %3199 = vmatprep.subr.bf16.mxu0 %v4970_v41  ;;  %v5061_v39 = vld [vmem:[%s5822_s28 + $0x998] ss:$36 sps:$4 sm:$0xff]   ;;  %v5064_v41 = vld [vmem:[%s5822_s28 + $0x4d0] ss:$36 sps:$4 sm:$0xff]  }
  0xb0   : > { %3252 = vmatprep.subr.bf16.mxu1 %v4973_v42  ;;  %v5067_v42 = vld [vmem:[%s5822_s28 + $0x950] ss:$36 sps:$4 sm:$0xff]  }
  0xb2   : > { %3200 = vmatpush2.bf16.msra.mxu0 %v4968_v43  ;;  %v5072_v43 = vld [vmem:[%s5822_s28 + $0x48c] ss:$36 sps:$4 sm:$0xff]  }
  0xb3   : > { %3253 = vmatpush2.bf16.msra.mxu1 %v4971_v44  ;;  %3201 = vmatprep.subr.bf16.mxu0 %v4976_v45  ;;  %v5075_v44 = vld [vmem:[%s5822_s28 + $0x90c] ss:$36 sps:$4 sm:$0xff]  }
  0xb4   : > { %3254 = vmatprep.subr.bf16.mxu1 %v4979_v46  ;;  %v5070_v45 = vld [vmem:[%s5822_s28 + $0x488] ss:$36 sps:$4 sm:$0xff]  }
  0xb5   : > { %v5073_v46 = vld [vmem:[%s5822_s28 + $0x908] ss:$36 sps:$4 sm:$0xff]  }
  0xb6   : > { %3202 = vmatpush2.bf16.msra.mxu0 %v4974_v47  ;;  %v5078_v47 = vld [vmem:[%s5822_s28 + $0x8c4] ss:$36 sps:$4 sm:$0xff]  }
  0xb7   : > { %3255 = vmatpush2.bf16.msra.mxu1 %v4977_v48  ;;  %3203 = vmatprep.subr.bf16.mxu0 %v4982_v49  ;;  %v5081_v48 = vld [vmem:[%s5822_s28 + $0xd44] ss:$36 sps:$4 sm:$0xff]  }
  0xb8   : > { %3256 = vmatprep.subr.bf16.mxu1 %v4985_v51  ;;  %v5076_v49 = vld [vmem:[%s5822_s28 + $0x8c0] ss:$36 sps:$4 sm:$0xff]  }
  0xb9   : > { %v5079_v51 = vld [vmem:[%s5822_s28 + $0xd40] ss:$36 sps:$4 sm:$0xff]  }
  0xba   : > { %3204 = vmatpush2.bf16.msra.mxu0 %v4980_v52  ;;  %v5084_v52 = vld [vmem:[%s5822_s28 + $0x87c] ss:$36 sps:$4 sm:$0xff]  }
  0xbb   : > { %3257 = vmatpush2.bf16.msra.mxu1 %v4983_v53  ;;  %3205 = vmatprep.subr.bf16.mxu0 %v4988_v54  ;;  %v5087_v53 = vld [vmem:[%s5822_s28 + $0xcfc] ss:$36 sps:$4 sm:$0xff]  }
  0xbc   : > { %3258 = vmatprep.subr.bf16.mxu1 %v4991_v55  ;;  %v5082_v54 = vld [vmem:[%s5822_s28 + $0x878] ss:$36 sps:$4 sm:$0xff]  }
  0xbd   : > { %v5085_v55 = vld [vmem:[%s5822_s28 + $0xcf8] ss:$36 sps:$4 sm:$0xff]  }
  0xbe   : > { %3206 = vmatpush2.bf16.msra.mxu0 %v4986_v56  ;;  %v5090_v56 = vld [vmem:[%s5822_s28 + $0x834] ss:$36 sps:$4 sm:$0xff]  }
  0xbf   : > { %3259 = vmatpush2.bf16.msra.mxu1 %v4989_v57  ;;  %3207 = vmatprep.subr.bf16.mxu0 %v4996_v58  ;;  %v5093_v57 = vld [vmem:[%s5822_s28 + $0xcb4] ss:$36 sps:$4 sm:$0xff]  }
  0xc0   : > { %3260 = vmatprep.subr.bf16.mxu1 %v4999_v59  ;;  %v5088_v58 = vld [vmem:[%s5822_s28 + $0x830] ss:$36 sps:$4 sm:$0xff]  }
  0xc1   : > { %v5091_v59 = vld [vmem:[%s5822_s28 + $0xcb0] ss:$36 sps:$4 sm:$0xff]  }
  0xc2   : > { %3208 = vmatpush2.bf16.msra.mxu0 %v4994_v60  ;;  %v5096_v60 = vld [vmem:[%s5822_s28 + $0x7ec] ss:$36 sps:$4 sm:$0xff]  }
  0xc3   : > { %3261 = vmatpush2.bf16.msra.mxu1 %v4997_v61  ;;  %3209 = vmatprep.subr.bf16.mxu0 %v5006_v62  ;;  %v5099_v61 = vld [vmem:[%s5822_s28 + $0xc6c] ss:$36 sps:$4 sm:$0xff]  }
  0xc4   : > { %3262 = vmatprep.subr.bf16.mxu1 %v5009_v63  ;;  %v5094_v62 = vld [vmem:[%s5822_s28 + $0x7e8] ss:$36 sps:$4 sm:$0xff]  }
  0xc5   : > { %v5097_v63 = vld [vmem:[%s5822_s28 + $0xc68] ss:$36 sps:$4 sm:$0xff]  }
  0xc6   : > { %3210 = vmatpush2.bf16.msra.mxu0 %v5004_v0  ;;  %v5102_v0 = vld [vmem:[%s5822_s28 + $0x7a4] ss:$36 sps:$4 sm:$0xff]  }
  0xc7   : > { %3263 = vmatpush2.bf16.msra.mxu1 %v5007_v1  ;;  %3211 = vmatprep.subr.bf16.mxu0 %v5012_v2  ;;  %v5105_v1 = vld [vmem:[%s5822_s28 + $0xc24] ss:$36 sps:$4 sm:$0xff]  }
  0xc8   : > { %3264 = vmatprep.subr.bf16.mxu1 %v5015_v3  ;;  %v5100_v2 = vld [vmem:[%s5822_s28 + $0x7a0] ss:$36 sps:$4 sm:$0xff]  }
  0xc9   : > { %v5103_v3 = vld [vmem:[%s5822_s28 + $0xc20] ss:$36 sps:$4 sm:$0xff]  }
  0xca   : > { %3212 = vmatpush2.bf16.msra.mxu0 %v5010_v6  ;;  %v5108_v6 = vld [vmem:[%s5822_s28 + $0x75c] ss:$36 sps:$4 sm:$0xff]  }
  0xcb   : > { %3265 = vmatpush2.bf16.msra.mxu1 %v5013_v7  ;;  %3213 = vmatprep.subr.bf16.mxu0 %v5018_v8  ;;  %v5111_v7 = vld [vmem:[%s5822_s28 + $0xbdc] ss:$36 sps:$4 sm:$0xff]  }
  0xcc   : > { %3266 = vmatprep.subr.bf16.mxu1 %v5021_v9  ;;  %v5106_v8 = vld [vmem:[%s5822_s28 + $0x758] ss:$36 sps:$4 sm:$0xff]  }
  0xcd   : > { %v5109_v9 = vld [vmem:[%s5822_s28 + $0xbd8] ss:$36 sps:$4 sm:$0xff]  }
  0xce   : > { %3214 = vmatpush2.bf16.msra.mxu0 %v5016_v10  ;;  %v5114_v10 = vld [vmem:[%s5822_s28 + $0x714] ss:$36 sps:$4 sm:$0xff]  }
  0xcf   : > { %3267 = vmatpush2.bf16.msra.mxu1 %v5019_v11  ;;  %3289 = vmatprep.subr.bf16.mxu0 %v5027_v12  ;;  %v5117_v11 = vld [vmem:[%s5822_s28 + $0xb94] ss:$36 sps:$4 sm:$0xff]  }
  0xd0   : > { %3342 = vmatprep.subr.bf16.mxu1 %v5030_v13  ;;  %v5112_v12 = vld [vmem:[%s5822_s28 + $0x710] ss:$36 sps:$4 sm:$0xff]  }
  0xd1   : > { %3216 = vmatmul.mubr.bf16.vlgmr.msra.gmra.mxu0 %v5986_v14  ;;  %v5115_v13 = vld [vmem:[%s5822_s28 + $0xb90] ss:$36 sps:$4 sm:$0xff]  }
  0xd2   : > { %3269 = vmatmul.mubr.bf16.vlgmr.msra.gmra.mxu1 %v5900_v4  ;;  %3290 = vmatpush1.bf16.msra.mxu0 %v5025_v15  ;;  %v5040_v4 = vld [vmem:[%s5822_s28 + $0x5f0] ss:$36 sps:$4 sm:$0xff]  }
  0xd3   : > { %3343 = vmatpush1.bf16.msra.mxu1 %v5028_v16  ;;  %3291 = vmatprep.subr.bf16.mxu0 %v5033_v17  ;;  %v5120_v15 = vld [vmem:[%s5822_s28 + $0x6cc] ss:$36 sps:$4 sm:$0xff]  }
  0xd4   : > { %3344 = vmatprep.subr.bf16.mxu1 %v5036_v18  ;;  %3225 = vmatprep.mubr.bf16.mxu0 %v5992_v19  ;;  %v5123_v16 = vld [vmem:[%s5822_s28 + $0xb4c] ss:$36 sps:$4 sm:$0xff]  }
  0xd5   : > { %3278 = vmatprep.mubr.bf16.mxu1 %v5922_v22  ;;  %v5054_v22 = vld [vmem:[%s5822_s28 + $0x564] ss:$36 sps:$4 sm:$0xff]  }
  0xd6   : > { %3292 = vmatpush1.bf16.msra.mxu0 %v5031_v20  ;;  %v5118_v17 = vld [vmem:[%s5822_s28 + $0x6c8] ss:$36 sps:$4 sm:$0xff]  }
  0xd7   : > { %3345 = vmatpush1.bf16.msra.mxu1 %v5034_v21  ;;  %3293 = vmatprep.subr.bf16.mxu0 %v5042_v23  ;;  %v5121_v18 = vld [vmem:[%s5822_s28 + $0xb48] ss:$36 sps:$4 sm:$0xff]  }
  0xd8   : > { %3346 = vmatprep.subr.bf16.mxu1 %v5045_v24  ;;  %v5126_v20 = vld [vmem:[%s5822_s28 + $0x20c] ss:$36 sps:$4 sm:$0xff]  }
  0xd9   : > { %3226 = vmatmul.mubr.bf16.gmra.mxu0 %v6001_v25  ;;  %v5129_v21 = vld [vmem:[%s5822_s28 + $0x68c] ss:$36 sps:$4 sm:$0xff]  }
  0xda   : > { %3279 = vmatmul.mubr.bf16.gmra.mxu1 %v5928_v27  ;;  %3294 = vmatpush1.bf16.msra.mxu0 %v5040_v4  ;;  %v5060_v27 = vld [vmem:[%s5822_s28 + $0x51c] ss:$36 sps:$4 sm:$0xff]   ;;  %v5124_v23 = vld [vmem:[%s5822_s28 + $0x208] ss:$36 sps:$4 sm:$0xff]  }
  0xdb   : > { %3347 = vmatpush1.bf16.msra.mxu1 %v5043_v26  ;;  %3295 = vmatprep.subr.bf16.mxu0 %v5048_v28  ;;  %v5127_v24 = vld [vmem:[%s5822_s28 + $0x688] ss:$36 sps:$4 sm:$0xff]   ;;  %v5130_v28 = vld [vmem:[%s5822_s28 + $0x1c0] ss:$36 sps:$4 sm:$0xff]  }
  0xdc   : > { %3348 = vmatprep.subr.bf16.mxu1 %v5051_v30  ;;  %3321 = vmatprep.mubr.bf16.mxu0 %v5879_v50  ;;  %v5066_v50 = vld [vmem:[%s5822_s28 + $0x4d4] ss:$36 sps:$4 sm:$0xff]   ;;  %v5132_v4 = vld [vmem:[%s5822_s28 + $0x1c4] ss:$36 sps:$4 sm:$0xff]  }
  0xdd   : > { %3374 = vmatprep.mubr.bf16.mxu1 %v5949_v40  ;;  %v5069_v40 = vld [vmem:[%s5822_s28 + $0x954] ss:$36 sps:$4 sm:$0xff]   ;;  %v5135_v26 = vld [vmem:[%s5822_s28 + $0x644] ss:$36 sps:$4 sm:$0xff]  }
  0xde   : > { %3296 = vmatpush1.bf16.msra.mxu0 %v5046_v32  ;;  %v5133_v30 = vld [vmem:[%s5822_s28 + $0x640] ss:$36 sps:$4 sm:$0xff]  }
  0xdf   : > { %3349 = vmatpush1.bf16.msra.mxu1 %v5049_v33  ;;  %3297 = vmatprep.subr.bf16.mxu0 %v5054_v22  ;;  %v5138_v32 = vld [vmem:[%s5822_s28 + $0x17c] ss:$36 sps:$4 sm:$0xff]  }
  0xe0   : > { %3350 = vmatprep.subr.bf16.mxu1 %v5057_v34  ;;  %v5141_v33 = vld [vmem:[%s5822_s28 + $0x5fc] ss:$36 sps:$4 sm:$0xff]   ;;  %v5147_v34 = vld [vmem:[%s5822_s28 + $0x5b4] ss:$36 sps:$4 sm:$0xff]  }
  0xe1   : > { %v5136_v22 = vld [vmem:[%s5822_s28 + $0x178] ss:$36 sps:$4 sm:$0xff]  }
  0xe2   : > { %3298 = vmatpush1.bf16.msra.mxu0 %v5052_v35  ;;  %v5142_v35 = vld [vmem:[%s5822_s28 + $0x130] ss:$36 sps:$4 sm:$0xff]  }
  0xe3   : > { %3351 = vmatpush1.bf16.msra.mxu1 %v5055_v36  ;;  %3299 = vmatprep.subr.bf16.mxu0 %v5060_v27  ;;  %v5153_v36 = vld [vmem:[%s5822_s28 + $0x56c] ss:$36 sps:$4 sm:$0xff]   ;;  %v6086_v27 = vld [vmem:[#allocation2 + $0x4] ss:$24 sps:$4 sm:$0xff]  }
  0xe4   : > { %3352 = vmatprep.subr.bf16.mxu1 %v5063_v37  ;;  %v5151_v37 = vld [vmem:[%s5822_s28 + $0x568] ss:$36 sps:$4 sm:$0xff]  }
  0xe6   : > { %3300 = vmatpush1.bf16.msra.mxu0 %v5058_v38  ;;  %v5156_v38 = vld [vmem:[%s5822_s28 + $0xa4] ss:$36 sps:$4 sm:$0xff]  }
  0xe7   : > { %3353 = vmatpush1.bf16.msra.mxu1 %v5061_v39  ;;  %3301 = vmatprep.subr.bf16.mxu0 %v5066_v50  ;;  %v5159_v39 = vld [vmem:[%s5822_s28 + $0x524] ss:$36 sps:$4 sm:$0xff]  }
  0xe8   : > { %3354 = vmatprep.subr.bf16.mxu1 %v5069_v40  ;;  %v5154_v50 = vld [vmem:[%s5822_s28 + $0xa0] ss:$36 sps:$4 sm:$0xff]  }
  0xe9   : > { %v5157_v40 = vld [vmem:[%s5822_s28 + $0x520] ss:$36 sps:$4 sm:$0xff]  }
  0xea   : > { %3302 = vmatpush1.bf16.msra.mxu0 %v5064_v41  ;;  %v5162_v41 = vld [vmem:[%s5822_s28 + $0x5c] ss:$36 sps:$4 sm:$0xff]  }
  0xeb   : > { %3355 = vmatpush1.bf16.msra.mxu1 %v5067_v42  ;;  %3303 = vmatprep.subr.bf16.mxu0 %v5072_v43  ;;  %v5165_v42 = vld [vmem:[%s5822_s28 + $0x4dc] ss:$36 sps:$4 sm:$0xff]  }
  0xec   : > { %3356 = vmatprep.subr.bf16.mxu1 %v5075_v44  ;;  %v5160_v43 = vld [vmem:[%s5822_s28 + $0x58] ss:$36 sps:$4 sm:$0xff]  }
  0xed   : > { %v5163_v44 = vld [vmem:[%s5822_s28 + $0x4d8] ss:$36 sps:$4 sm:$0xff]  }
  0xee   : > { %3304 = vmatpush1.bf16.msra.mxu0 %v5070_v45  ;;  %v5168_v45 = vld [vmem:[%s5822_s28 + $0x14] ss:$36 sps:$4 sm:$0xff]  }
  0xef   : > { %3357 = vmatpush1.bf16.msra.mxu1 %v5073_v46  ;;  %3305 = vmatprep.subr.bf16.mxu0 %v5078_v47  ;;  %v5171_v46 = vld [vmem:[%s5822_s28 + $0x494] ss:$36 sps:$4 sm:$0xff]  }
  0xf0   : > { %3358 = vmatprep.subr.bf16.mxu1 %v5081_v48  ;;  %v5166_v47 = vld [vmem:[%s5822_s28 + $0x10] ss:$36 sps:$4 sm:$0xff]  }
  0xf1   : > { %v5169_v48 = vld [vmem:[%s5822_s28 + $0x490] ss:$36 sps:$4 sm:$0xff]  }
  0xf2   : > { %3306 = vmatpush2.bf16.msra.mxu0 %v5076_v49  ;;  %v5174_v49 = vld [vmem:[%s5822_s28 + $0x44c] ss:$36 sps:$4 sm:$0xff]  }
  0xf3   : > { %3359 = vmatpush2.bf16.msra.mxu1 %v5079_v51  ;;  %3307 = vmatprep.subr.bf16.mxu0 %v5084_v52  ;;  %v5177_v51 = vld [vmem:[%s5822_s28 + $0x8cc] ss:$36 sps:$4 sm:$0xff]  }
  0xf4   : > { %3360 = vmatprep.subr.bf16.mxu1 %v5087_v53  ;;  %v5172_v52 = vld [vmem:[%s5822_s28 + $0x448] ss:$36 sps:$4 sm:$0xff]  }
  0xf5   : > { %v5175_v53 = vld [vmem:[%s5822_s28 + $0x8c8] ss:$36 sps:$4 sm:$0xff]  }
  0xf6   : > { %3308 = vmatpush2.bf16.msra.mxu0 %v5082_v54  ;;  %v5180_v54 = vld [vmem:[%s5822_s28 + $0x404] ss:$36 sps:$4 sm:$0xff]  }
  0xf7   : > { %3361 = vmatpush2.bf16.msra.mxu1 %v5085_v55  ;;  %3309 = vmatprep.subr.bf16.mxu0 %v5090_v56  ;;  %v5183_v55 = vld [vmem:[%s5822_s28 + $0x884] ss:$36 sps:$4 sm:$0xff]  }
  0xf8   : > { %3362 = vmatprep.subr.bf16.mxu1 %v5093_v57  ;;  %v5178_v56 = vld [vmem:[%s5822_s28 + $0x400] ss:$36 sps:$4 sm:$0xff]  }
  0xf9   : > { %v5181_v57 = vld [vmem:[%s5822_s28 + $0x880] ss:$36 sps:$4 sm:$0xff]  }
  0xfa   : > { %3310 = vmatpush2.bf16.msra.mxu0 %v5088_v58  ;;  %v5186_v58 = vld [vmem:[%s5822_s28 + $0x3bc] ss:$36 sps:$4 sm:$0xff]  }
  0xfb   : > { %3363 = vmatpush2.bf16.msra.mxu1 %v5091_v59  ;;  %3311 = vmatprep.subr.bf16.mxu0 %v5096_v60  ;;  %v5189_v59 = vld [vmem:[%s5822_s28 + $0x83c] ss:$36 sps:$4 sm:$0xff]  }
  0xfc   : > { %3364 = vmatprep.subr.bf16.mxu1 %v5099_v61  ;;  %v5184_v60 = vld [vmem:[%s5822_s28 + $0x3b8] ss:$36 sps:$4 sm:$0xff]  }
  0xfd   : > { %v5187_v61 = vld [vmem:[%s5822_s28 + $0x838] ss:$36 sps:$4 sm:$0xff]  }
  0xfe   : > { %3312 = vmatpush2.bf16.msra.mxu0 %v5094_v62  ;;  %v5192_v62 = vld [vmem:[%s5822_s28 + $0x374] ss:$36 sps:$4 sm:$0xff]  }
  0xff   : > { %3365 = vmatpush2.bf16.msra.mxu1 %v5097_v63  ;;  %3313 = vmatprep.subr.bf16.mxu0 %v5102_v0  ;;  %v5195_v63 = vld [vmem:[%s5822_s28 + $0x7f4] ss:$36 sps:$4 sm:$0xff]  }
 0x100   : > { %3366 = vmatprep.subr.bf16.mxu1 %v5105_v1  ;;  %v5190_v0 = vld [vmem:[%s5822_s28 + $0x370] ss:$36 sps:$4 sm:$0xff]  }
 0x101   : > { %v5193_v1 = vld [vmem:[%s5822_s28 + $0x7f0] ss:$36 sps:$4 sm:$0xff]  }
 0x102   : > { %3314 = vmatpush2.bf16.msra.mxu0 %v5100_v2  ;;  %v5198_v2 = vld [vmem:[%s5822_s28 + $0x32c] ss:$36 sps:$4 sm:$0xff]  }
 0x103   : > { %3367 = vmatpush2.bf16.msra.mxu1 %v5103_v3  ;;  %3315 = vmatprep.subr.bf16.mxu0 %v5108_v6  ;;  %v5201_v3 = vld [vmem:[%s5822_s28 + $0x7ac] ss:$36 sps:$4 sm:$0xff]  }
 0x104   : > { %3368 = vmatprep.subr.bf16.mxu1 %v5111_v7  ;;  %v5196_v6 = vld [vmem:[%s5822_s28 + $0x328] ss:$36 sps:$4 sm:$0xff]  }
 0x105   : > { %v5199_v7 = vld [vmem:[%s5822_s28 + $0x7a8] ss:$36 sps:$4 sm:$0xff]  }
 0x106   : > { %3316 = vmatpush2.bf16.msra.mxu0 %v5106_v8  ;;  %v5204_v8 = vld [vmem:[%s5822_s28 + $0x2e4] ss:$36 sps:$4 sm:$0xff]  }
 0x107   : > { %3369 = vmatpush2.bf16.msra.mxu1 %v5109_v9  ;;  %3317 = vmatprep.subr.bf16.mxu0 %v5114_v10  ;;  %v5207_v9 = vld [vmem:[%s5822_s28 + $0x764] ss:$36 sps:$4 sm:$0xff]  }
 0x108   : > { %3370 = vmatprep.subr.bf16.mxu1 %v5117_v11  ;;  %v5202_v10 = vld [vmem:[%s5822_s28 + $0x2e0] ss:$36 sps:$4 sm:$0xff]  }
 0x109   : > { %v5205_v11 = vld [vmem:[%s5822_s28 + $0x760] ss:$36 sps:$4 sm:$0xff]  }
 0x10a   : > { %3318 = vmatpush2.bf16.msra.mxu0 %v5112_v12  ;;  %v5210_v12 = vld [vmem:[%s5822_s28 + $0x29c] ss:$36 sps:$4 sm:$0xff]  }
 0x10b   : > { %3371 = vmatpush2.bf16.msra.mxu1 %v5115_v13  ;;  %3319 = vmatprep.subr.bf16.mxu0 %v5120_v15  ;;  %v5213_v13 = vld [vmem:[%s5822_s28 + $0x71c] ss:$36 sps:$4 sm:$0xff]  }
 0x10c   : > { %3372 = vmatprep.subr.bf16.mxu1 %v5123_v16  ;;  %v5208_v15 = vld [vmem:[%s5822_s28 + $0x298] ss:$36 sps:$4 sm:$0xff]  }
 0x10d   : > { %v5211_v16 = vld [vmem:[%s5822_s28 + $0x718] ss:$36 sps:$4 sm:$0xff]  }
 0x10e   : > { %3320 = vmatpush2.bf16.msra.mxu0 %v5118_v17  ;;  %v5216_v17 = vld [vmem:[%s5822_s28 + $0x254] ss:$36 sps:$4 sm:$0xff]  }
 0x10f   : > { %3373 = vmatpush2.bf16.msra.mxu1 %v5121_v18  ;;  %3395 = vmatprep.subr.bf16.mxu0 %v5126_v20  ;;  %v5219_v18 = vld [vmem:[%s5822_s28 + $0x6d4] ss:$36 sps:$4 sm:$0xff]  }
 0x110   : > { %3448 = vmatprep.subr.bf16.mxu1 %v5129_v21  ;;  %v5214_v20 = vld [vmem:[%s5822_s28 + $0x250] ss:$36 sps:$4 sm:$0xff]  }
 0x111   : > { %3322 = vmatmul.mubr.bf16.vlgmr.msra.gmra.mxu0 %v5902_v5  ;;  %v5139_v5 = vld [vmem:[%s5822_s28 + $0x5f8] ss:$36 sps:$4 sm:$0xff]   ;;  %v5217_v21 = vld [vmem:[%s5822_s28 + $0x6d0] ss:$36 sps:$4 sm:$0xff]  }
 0x112   : > { %3375 = vmatmul.mubr.bf16.vlgmr.msra.gmra.mxu1 %v5986_v14  ;;  %3396 = vmatpush1.bf16.msra.mxu0 %v5124_v23  ;;  %v5144_v14 = vld [vmem:[%s5822_s28 + $0x134] ss:$36 sps:$4 sm:$0xff]   ;;  %v5222_v23 = vld [vmem:[%s5822_s28 + $0xb0c] ss:$36 sps:$4 sm:$0xff]  }
 0x113   : > { %3449 = vmatpush1.bf16.msra.mxu1 %v5127_v24  ;;  %3397 = vmatprep.subr.bf16.mxu0 %v5132_v4  ;;  %v5225_v24 = vld [vmem:[%s5822_s28 + $0x214] ss:$36 sps:$4 sm:$0xff]   ;;  %v5220_v4 = vld [vmem:[%s5822_s28 + $0xb08] ss:$36 sps:$4 sm:$0xff]  }
 0x114   : > { %3450 = vmatprep.subr.bf16.mxu1 %v5135_v26  ;;  %3331 = vmatprep.mubr.bf16.mxu0 %v5932_v29  ;;  %v5145_v29 = vld [vmem:[%s5822_s28 + $0x5b0] ss:$36 sps:$4 sm:$0xff]  }
 0x115   : > { %3384 = vmatprep.mubr.bf16.mxu1 %v5992_v19  ;;  %v5150_v19 = vld [vmem:[%s5822_s28 + $0xec] ss:$36 sps:$4 sm:$0xff]  }
 0x116   : > { %3398 = vmatpush1.bf16.msra.mxu0 %v5130_v28  ;;  %v5223_v26 = vld [vmem:[%s5822_s28 + $0x210] ss:$36 sps:$4 sm:$0xff]   ;;  %v5228_v28 = vld [vmem:[%s5822_s28 + $0xac4] ss:$36 sps:$4 sm:$0xff]  }
 0x117   : > { %3451 = vmatpush1.bf16.msra.mxu1 %v5133_v30  ;;  %3399 = vmatprep.subr.bf16.mxu0 %v5138_v32  ;;  %v5231_v30 = vld [vmem:[%s5822_s28 + $0x1cc] ss:$36 sps:$4 sm:$0xff]   ;;  %v764_v32 = vlaneseq }
 0x118   : > { %3452 = vmatprep.subr.bf16.mxu1 %v5141_v33  ;;  %v6145_v33 = vld [vmem:[#allocation2] ss:$24 sps:$4 sm:$0xff]  }
 0x119   : > { %3332 = vmatmul.mubr.bf16.gmra.mxu0 %v5936_v31  ;;  %v6089_v31 = vld [vmem:[#allocation2 + $0xc] ss:$24 sps:$4 sm:$0xff]  }
 0x11a   : > { %3385 = vmatmul.mubr.bf16.gmra.mxu1 %v6001_v25  ;;  %3400 = vmatpush1.bf16.msra.mxu0 %v5136_v22  ;;  %v5148_v25 = vld [vmem:[%s5822_s28 + $0xe8] ss:$36 sps:$4 sm:$0xff]  }
 0x11b   : > { %3453 = vmatpush1.bf16.msra.mxu1 %v5139_v5  ;;  %3401 = vmatprep.subr.bf16.mxu0 %v5144_v14  ;;  %v6148_v22 = vld [vmem:[#allocation2 + $0x8] ss:$24 sps:$4 sm:$0xff]  }
 0x11c   : > { %3454 = vmatprep.subr.bf16.mxu1 %v5147_v34  ;;  %3427 = vmatprep.mubr.bf16.mxu0 %v6086_v27  ;;  %v5226_v5 = vld [vmem:[%s5822_s28 + $0xac0] ss:$36 sps:$4 sm:$0xff]   ;;  %v5229_v14 = vld [vmem:[%s5822_s28 + $0x1c8] ss:$36 sps:$4 sm:$0xff]  }
 0x11d   : > { %3480 = vmatprep.mubr.bf16.mxu1 %v6089_v31  ;;  %v5234_v34 = vld [vmem:[%s5822_s28 + $0xa7c] ss:$36 sps:$4 sm:$0xff]  }
 0x11e   : > { %3402 = vmatpush1.bf16.msra.mxu0 %v5142_v35  ;;  %v5237_v35 = vld [vmem:[%s5822_s28 + $0x184] ss:$36 sps:$4 sm:$0xff]  }
 0x11f   : > { %3455 = vmatpush1.bf16.msra.mxu1 %v5145_v29  ;;  %3403 = vmatprep.subr.bf16.mxu0 %v5150_v19  ;;  %v5232_v29 = vld [vmem:[%s5822_s28 + $0xa78] ss:$36 sps:$4 sm:$0xff]   ;;  %v6156_v19 = vld [vmem:[#allocation2 + $0x34] ss:$24 sps:$4 sm:$0xff]  }
 0x120   : > { %3456 = vmatprep.subr.bf16.mxu1 %v5153_v36  ;;  %v6159_v36 = vld [vmem:[#allocation2 + $0x3c] ss:$24 sps:$4 sm:$0xff]  }
 0x122   : > { %3404 = vmatpush1.bf16.msra.mxu0 %v5148_v25  ;;  %v6162_v25 = vshrl.u32 %v764_v32, 7 }
 0x123   : > { %3457 = vmatpush1.bf16.msra.mxu1 %v5151_v37  ;;  %3405 = vmatprep.subr.bf16.mxu0 %v5156_v38  ;;  %v5235_v37 = vld [vmem:[%s5822_s28 + $0x180] ss:$36 sps:$4 sm:$0xff]   ;;  %v5240_v38 = vld [vmem:[%s5822_s28 + $0xa34] ss:$36 sps:$4 sm:$0xff]  }
 0x124   : > { %3458 = vmatprep.subr.bf16.mxu1 %v5159_v39  ;;  %v5243_v39 = vld [vmem:[%s5822_s28 + $0x13c] ss:$36 sps:$4 sm:$0xff]  }
 0x126   : > { %3406 = vmatpush1.bf16.msra.mxu0 %v5154_v50  ;;  %v5238_v50 = vld [vmem:[%s5822_s28 + $0xa30] ss:$36 sps:$4 sm:$0xff]  }
 0x127   : > { %3459 = vmatpush1.bf16.msra.mxu1 %v5157_v40  ;;  %3407 = vmatprep.subr.bf16.mxu0 %v5162_v41  ;;  %v5241_v40 = vld [vmem:[%s5822_s28 + $0x138] ss:$36 sps:$4 sm:$0xff]   ;;  %v6169_v41 = vld [vmem:[#allocation2 + $0x30] ss:$24 sps:$4 sm:$0xff]  }
 0x128   : > { %3460 = vmatprep.subr.bf16.mxu1 %v5165_v42  ;;  %v6172_v42 = vld [vmem:[#allocation2 + $0x38] ss:$24 sps:$4 sm:$0xff]  }
 0x12a   : > { %3408 = vmatpush1.bf16.msra.mxu0 %v5160_v43  ;;  %v5246_v43 = vld [vmem:[%s5822_s28 + $0x9ec] ss:$36 sps:$4 sm:$0xff]  }
 0x12b   : > { %3461 = vmatpush1.bf16.msra.mxu1 %v5163_v44  ;;  %3409 = vmatprep.subr.bf16.mxu0 %v5168_v45  ;;  %v5249_v44 = vld [vmem:[%s5822_s28 + $0xf4] ss:$36 sps:$4 sm:$0xff]   ;;  %v5244_v45 = vld [vmem:[%s5822_s28 + $0x9e8] ss:$36 sps:$4 sm:$0xff]  }
 0x12c   : > { %3462 = vmatprep.subr.bf16.mxu1 %v5171_v46  ;;  %v6178_v46 = vld [vmem:[#allocation2 + $0x14] ss:$24 sps:$4 sm:$0xff]  }
 0x12e   : > { %3410 = vmatpush1.bf16.msra.mxu0 %v5166_v47  ;;  %v5247_v47 = vld [vmem:[%s5822_s28 + $0xf0] ss:$36 sps:$4 sm:$0xff]  }
 0x12f   : > { %3463 = vmatpush1.bf16.msra.mxu1 %v5169_v48  ;;  %3411 = vmatprep.subr.bf16.mxu0 %v5174_v49  ;;  %v5252_v48 = vld [vmem:[%s5822_s28 + $0x9a4] ss:$36 sps:$4 sm:$0xff]   ;;  %v5255_v49 = vld [vmem:[%s5822_s28 + $0xac] ss:$36 sps:$4 sm:$0xff]  }
 0x130   : > { %3464 = vmatprep.subr.bf16.mxu1 %v5177_v51  ;;  %v5250_v51 = vld [vmem:[%s5822_s28 + $0x9a0] ss:$36 sps:$4 sm:$0xff]  }
 0x132   : > { %3412 = vmatpush2.bf16.msra.mxu0 %v5172_v52  ;;  %v5253_v52 = vld [vmem:[%s5822_s28 + $0xa8] ss:$36 sps:$4 sm:$0xff]  }
 0x133   : > { %3465 = vmatpush2.bf16.msra.mxu1 %v5175_v53  ;;  %3413 = vmatprep.subr.bf16.mxu0 %v5180_v54  ;;  %v5258_v53 = vld [vmem:[%s5822_s28 + $0x95c] ss:$36 sps:$4 sm:$0xff]  }
 0x134   : > { %3466 = vmatprep.subr.bf16.mxu1 %v5183_v55  ;;  %v5256_v54 = vld [vmem:[%s5822_s28 + $0x958] ss:$36 sps:$4 sm:$0xff]   ;;  %v5259_v55 = vld [vmem:[%s5822_s28 + $0x60] ss:$36 sps:$4 sm:$0xff]  }
 0x136   : > { %3414 = vmatpush2.bf16.msra.mxu0 %v5178_v56  ;;  %v5264_v56 = vld [vmem:[%s5822_s28 + $0x914] ss:$36 sps:$4 sm:$0xff]  }
 0x137   : > { %3467 = vmatpush2.bf16.msra.mxu1 %v5181_v57  ;;  %3415 = vmatprep.subr.bf16.mxu0 %v5186_v58  ;;  %v5267_v57 = vld [vmem:[%s5822_s28 + $0x1c] ss:$36 sps:$4 sm:$0xff]   ;;  %v5262_v58 = vld [vmem:[%s5822_s28 + $0x910] ss:$36 sps:$4 sm:$0xff]  }
 0x138   : > { %3468 = vmatprep.subr.bf16.mxu1 %v5189_v59  ;;  %v5265_v59 = vld [vmem:[%s5822_s28 + $0x18] ss:$36 sps:$4 sm:$0xff]  }
 0x13a   : > { %3416 = vmatpush2.bf16.msra.mxu0 %v5184_v60  ;;  %v5270_v60 = vld [vmem:[%s5822_s28 + $0xd4c] ss:$36 sps:$4 sm:$0xff]  }
 0x13b   : > { %3469 = vmatpush2.bf16.msra.mxu1 %v5187_v61  ;;  %3417 = vmatprep.subr.bf16.mxu0 %v5192_v62  ;;  %v5273_v61 = vld [vmem:[%s5822_s28 + $0x454] ss:$36 sps:$4 sm:$0xff]   ;;  %v5268_v62 = vld [vmem:[%s5822_s28 + $0xd48] ss:$36 sps:$4 sm:$0xff]  }
 0x13c   : > { %3470 = vmatprep.subr.bf16.mxu1 %v5195_v63  ;;  %v5271_v63 = vld [vmem:[%s5822_s28 + $0x450] ss:$36 sps:$4 sm:$0xff]  }
 0x13e   : > { %3418 = vmatpush2.bf16.msra.mxu0 %v5190_v0  ;;  %v5276_v0 = vld [vmem:[%s5822_s28 + $0xd04] ss:$36 sps:$4 sm:$0xff]  }
 0x13f   : > { %3471 = vmatpush2.bf16.msra.mxu1 %v5193_v1  ;;  %3419 = vmatprep.subr.bf16.mxu0 %v5198_v2  ;;  %v5279_v1 = vld [vmem:[%s5822_s28 + $0x40c] ss:$36 sps:$4 sm:$0xff]   ;;  %v5274_v2 = vld [vmem:[%s5822_s28 + $0xd00] ss:$36 sps:$4 sm:$0xff]  }
 0x140   : > { %3472 = vmatprep.subr.bf16.mxu1 %v5201_v3  ;;  %v5277_v3 = vld [vmem:[%s5822_s28 + $0x408] ss:$36 sps:$4 sm:$0xff]  }
 0x142   : > { %3420 = vmatpush2.bf16.msra.mxu0 %v5196_v6  ;;  %v5282_v6 = vld [vmem:[%s5822_s28 + $0xcbc] ss:$36 sps:$4 sm:$0xff]  }
 0x143   : > { %3473 = vmatpush2.bf16.msra.mxu1 %v5199_v7  ;;  %3421 = vmatprep.subr.bf16.mxu0 %v5204_v8  ;;  %v5285_v7 = vld [vmem:[%s5822_s28 + $0x3c4] ss:$36 sps:$4 sm:$0xff]   ;;  %v5280_v8 = vld [vmem:[%s5822_s28 + $0xcb8] ss:$36 sps:$4 sm:$0xff]  }
 0x144   : > { %3474 = vmatprep.subr.bf16.mxu1 %v5207_v9 }
 0x146   : > { %3422 = vmatpush2.bf16.msra.mxu0 %v5202_v10  ;;  %v5283_v10 = vld [vmem:[%s5822_s28 + $0x3c0] ss:$36 sps:$4 sm:$0xff]  }
 0x147   : > { %3475 = vmatpush2.bf16.msra.mxu1 %v5205_v11  ;;  %3423 = vmatprep.subr.bf16.mxu0 %v5210_v12  ;;  %v5288_v11 = vld [vmem:[%s5822_s28 + $0xc74] ss:$36 sps:$4 sm:$0xff]   ;;  %v5291_v12 = vld [vmem:[%s5822_s28 + $0x37c] ss:$36 sps:$4 sm:$0xff]  }
 0x148   : > { %3476 = vmatprep.subr.bf16.mxu1 %v5213_v13  ;;  %v5286_v13 = vld [vmem:[%s5822_s28 + $0xc70] ss:$36 sps:$4 sm:$0xff]  }
 0x14a   : > { %3424 = vmatpush2.bf16.msra.mxu0 %v5208_v15 }
 0x14b   : > { %3477 = vmatpush2.bf16.msra.mxu1 %v5211_v16  ;;  %3425 = vmatprep.subr.bf16.mxu0 %v5216_v17  ;;  %v5289_v16 = vld [vmem:[%s5822_s28 + $0x378] ss:$36 sps:$4 sm:$0xff]   ;;  %v5294_v17 = vld [vmem:[%s5822_s28 + $0xc2c] ss:$36 sps:$4 sm:$0xff]  }
 0x14c   : > { %3478 = vmatprep.subr.bf16.mxu1 %v5219_v18  ;;  %v5297_v18 = vld [vmem:[%s5822_s28 + $0x334] ss:$36 sps:$4 sm:$0xff]  }
 0x14e   : > { %3426 = vmatpush2.bf16.msra.mxu0 %v5214_v20  ;;  %v5292_v20 = vld [vmem:[%s5822_s28 + $0xc28] ss:$36 sps:$4 sm:$0xff]  }
 0x14f   : > { %3479 = vmatpush2.bf16.msra.mxu1 %v5217_v21  ;;  %3501 = vmatprep.subr.bf16.mxu0 %v5222_v23  ;;  %v5295_v23 = vld [vmem:[%s5822_s28 + $0x330] ss:$36 sps:$4 sm:$0xff]  }
 0x150   : > { %3554 = vmatprep.subr.bf16.mxu1 %v5225_v24  ;;  %v5300_v24 = vld [vmem:[%s5822_s28 + $0xbe4] ss:$36 sps:$4 sm:$0xff]  }
 0x151   : > { %3428 = vmatmul.mubr.bf16.vlgmr.msra.gmra.mxu0 %v6145_v33  ;;  %v6206_v9 = vpop.f32.mrf.mxu0 }
 0x152   : > { %3481 = vmatmul.mubr.bf16.vlgmr.msra.gmra.mxu1 %v6148_v22  ;;  %3502 = vmatpush1.bf16.msra.mxu0 %v5220_v4  ;;  %v5303_v4 = vld [vmem:[%s5822_s28 + $0x2ec] ss:$36 sps:$4 sm:$0xff]  }
 0x153   : > { %3555 = vmatpush1.bf16.msra.mxu1 %v5223_v26  ;;  %3503 = vmatprep.subr.bf16.mxu0 %v5228_v28  ;;  %v3113_v15 = vpop.f32.mrf.mxu0  ;;  %v5298_v26 = vld [vmem:[%s5822_s28 + $0xbe0] ss:$36 sps:$4 sm:$0xff]   ;;  %v5301_v28 = vld [vmem:[%s5822_s28 + $0x2e8] ss:$36 sps:$4 sm:$0xff]  }
 0x154   : > { %3556 = vmatprep.subr.bf16.mxu1 %v5231_v30  ;;  %3437 = vmatprep.mubr.bf16.mxu0 %v6156_v19  ;;  %v3164_v30 = vpop.f32.mrf.mxu1 }
 0x155   : > { %3490 = vmatprep.mubr.bf16.mxu1 %v6159_v36  ;;  %v3115_v21 = vpop.f32.mrf.mxu0 }
 0x156   : > { %3504 = vmatpush1.bf16.msra.mxu0 %v5226_v5  ;;  %v5306_v5 = vld [vmem:[%s5822_s28 + $0xb9c] ss:$36 sps:$4 sm:$0xff]  }
 0x157   : > { %3557 = vmatpush1.bf16.msra.mxu1 %v5229_v14  ;;  %3505 = vmatprep.subr.bf16.mxu0 %v5234_v34  ;;  %v3117_v32 = vpop.f32.mrf.mxu0  ;;  %v5309_v34 = vld [vmem:[%s5822_s28 + $0x2a4] ss:$36 sps:$4 sm:$0xff]  }
 0x158   : > { %3558 = vmatprep.subr.bf16.mxu1 %v5237_v35  ;;  %v3166_v35 = vpop.f32.mrf.mxu1 }
 0x159   : > { %3438 = vmatmul.mubr.bf16.gmra.mxu0 %v6169_v41  ;;  %v6222_v14 = vpop.f32.mrf.mxu0 }
 0x15a   : > { %3491 = vmatmul.mubr.bf16.gmra.mxu1 %v6172_v42  ;;  %3506 = vmatpush1.bf16.msra.mxu0 %v5232_v29  ;;  %v766_v29 = vsub.s32 0, %v6162_v25 }
 0x15b   : > { %3559 = vmatpush1.bf16.msra.mxu1 %v5235_v37  ;;  %3507 = vmatprep.subr.bf16.mxu0 %v5240_v38  ;;  %v770_v37 = vsub.s32 1, %v6162_v25  ;;  %v5304_v38 = vld [vmem:[%s5822_s28 + $0xb98] ss:$36 sps:$4 sm:$0xff]  }
 0x15c   : > { %3560 = vmatprep.subr.bf16.mxu1 %v5243_v39  ;;  %3533 = vmatprep.mubr.bf16.mxu0 %v6178_v46  ;;  %v5307_v39 = vld [vmem:[%s5822_s28 + $0x2a0] ss:$36 sps:$4 sm:$0xff]  }
 0x15d   : > { %3586 = vmatprep.mubr.bf16.mxu1 %v6086_v27  ;;  %v5261_v27 = vld [vmem:[%s5822_s28 + $0x64] ss:$36 sps:$4 sm:$0xff]  }
 0x15e   : > { %3508 = vmatpush1.bf16.msra.mxu0 %v5238_v50  ;;  %v6234_v50 = vld [vmem:[%s6231_s20] sm:$0xff] }
 0x15f   : > { %3561 = vmatpush1.bf16.msra.mxu1 %v5241_v40  ;;  %3509 = vmatprep.subr.bf16.mxu0 %v5246_v43  ;;  %v3123_v40 = vpop.f32.mrf.mxu0  ;;  %v5312_v43 = vld [vmem:[%s5822_s28 + $0xb54] ss:$36 sps:$4 sm:$0xff]  }
 0x160   : > { %3562 = vmatprep.subr.bf16.mxu1 %v5249_v44  ;;  %v5315_v44 = vld [vmem:[%s5822_s28 + $0x25c] ss:$36 sps:$4 sm:$0xff]  }
 0x162   : > { %3510 = vmatpush1.bf16.msra.mxu0 %v5244_v45  ;;  %v3168_v45 = vpop.f32.mrf.mxu1 }
 0x163   : > { %3563 = vmatpush1.bf16.msra.mxu1 %v5247_v47  ;;  %3511 = vmatprep.subr.bf16.mxu0 %v5252_v48  ;;  %v6239_v47 = vrot.slane %v6234_v50, %v766_v29  ;;  %v6242_v48 = vrot.slane %v6234_v50, %v770_v37  ;;  %v6286_v29 = vld [vmem:[#allocation2 + $0x40] ss:$24 sps:$4 sm:$0xff]  }
 0x164   : > { %3564 = vmatprep.subr.bf16.mxu1 %v5255_v49  ;;  %v5310_v49 = vld [vmem:[%s5822_s28 + $0xb50] ss:$36 sps:$4 sm:$0xff]  }
 0x166   : > { %3512 = vmatpush1.bf16.msra.mxu0 %v5250_v51  ;;  %v5313_v51 = vld [vmem:[%s5822_s28 + $0x258] ss:$36 sps:$4 sm:$0xff]  }
 0x167   : > { %3565 = vmatpush1.bf16.msra.mxu1 %v5253_v52  ;;  %3513 = vmatprep.subr.bf16.mxu0 %v5258_v53  ;;  %v6246_v52 = vpop.f32.mrf.mxu0  ;;  %v5318_v53 = vld [vmem:[%s5822_s28 + $0x694] ss:$36 sps:$4 sm:$0xff]  }
 0x168   : > { %3566 = vmatprep.subr.bf16.mxu1 %v5261_v27  ;;  %v5321_v27 = vld [vmem:[%s5822_s28 + $0xb14] ss:$36 sps:$4 sm:$0xff]  }
 0x16a   : > { %3514 = vmatpush1.bf16.msra.mxu0 %v5256_v54  ;;  %v3170_v54 = vpop.f32.mrf.mxu1 }
 0x16b   : > { %3567 = vmatpush1.bf16.msra.mxu1 %v5259_v55  ;;  %3515 = vmatprep.subr.bf16.mxu0 %v5264_v56  ;;  %v3112_v55 = vadd.f32 %v6206_v9, %v6239_v47  ;;  %v3114_v56 = vadd.f32 %v3113_v15, %v6242_v48 }
 0x16c   : > { %3568 = vmatprep.subr.bf16.mxu1 %v5267_v57  ;;  %v5316_v57 = vld [vmem:[%s5822_s28 + $0x690] ss:$36 sps:$4 sm:$0xff]  }
 0x16e   : > { %3516 = vmatpush1.bf16.msra.mxu0 %v5262_v58  ;;  %v5319_v58 = vld [vmem:[%s5822_s28 + $0xb10] ss:$36 sps:$4 sm:$0xff]  }
 0x16f   : > { %3569 = vmatpush1.bf16.msra.mxu1 %v5265_v59  ;;  %3517 = vmatprep.subr.bf16.mxu0 %v5270_v60  ;;  %v3174_v59 = vpop.f32.mrf.mxu1  ;;  %v3127_v60 = vpop.f32.mrf.mxu0 }
 0x170   : > { %3570 = vmatprep.subr.bf16.mxu1 %v5273_v61  ;;  %v5324_v61 = vld [vmem:[%s5822_s28 + $0x64c] ss:$36 sps:$4 sm:$0xff]  }
 0x171   : > { %v3176_v9 = vpop.f32.mrf.mxu1 }
 0x172   : > { %3518 = vmatpush2.bf16.msra.mxu0 %v5268_v62  ;;  %v5327_v62 = vld [vmem:[%s5822_s28 + $0xacc] ss:$36 sps:$4 sm:$0xff]  }
 0x173   : > { %3571 = vmatpush2.bf16.msra.mxu1 %v5271_v63  ;;  %3519 = vmatprep.subr.bf16.mxu0 %v5276_v0  ;;  %v3116_v63 = vadd.f32 %v3115_v21, %v6239_v47  ;;  %v3124_v21 = vadd.f32 %v3123_v40, %v6242_v48  ;;  %v5334_v40 = vld [vmem:[%s5822_s28 + $0x5b8] ss:$36 sps:$4 sm:$0xff]  }
 0x174   : > { %3572 = vmatprep.subr.bf16.mxu1 %v5279_v1  ;;  %v6258_v1 = vld [vmem:[#allocation2 + $0x10] ss:$24 sps:$4 sm:$0xff]  }
 0x175   : > { %v3177_v37 = vadd.f32 %v3176_v9, %v3124_v21  ;;  %v5366_v9 = vld [vmem:[%s5822_s28 + $0x8d4] ss:$36 sps:$4 sm:$0xff]  }
 0x176   : > { %3520 = vmatpush2.bf16.msra.mxu0 %v5274_v2  ;;  %v3165_v2 = vadd.f32 %v3164_v30, %v3112_v55  ;;  %v5339_v30 = vld [vmem:[%s5822_s28 + $0xa3c] ss:$36 sps:$4 sm:$0xff]   ;;  %v5343_v55 = vld [vmem:[%s5822_s28 + $0x9f0] ss:$36 sps:$4 sm:$0xff]  }
 0x177   : > { %3573 = vmatpush2.bf16.msra.mxu1 %v5277_v3  ;;  %3521 = vmatprep.subr.bf16.mxu0 %v5282_v6  ;;  %v3167_v3 = vadd.f32 %v3166_v35, %v3114_v56  ;;  %v3118_v6 = vadd.f32 %v3117_v32, %v6242_v48 }
 0x178   : > { %3574 = vmatprep.subr.bf16.mxu1 %v5285_v7  ;;  %v5322_v7 = vld [vmem:[%s5822_s28 + $0x648] ss:$36 sps:$4 sm:$0xff]  }
 0x17a   : > { %3522 = vmatpush2.bf16.msra.mxu0 %v5280_v8  ;;  %v5325_v8 = vld [vmem:[%s5822_s28 + $0xac8] ss:$36 sps:$4 sm:$0xff]  }
 0x17b   : > { %3575 = vmatpush2.bf16.msra.mxu1 %v5283_v10  ;;  %3523 = vmatprep.subr.bf16.mxu0 %v5288_v11  ;;  %v5330_v11 = vld [vmem:[%s5822_s28 + $0x604] ss:$36 sps:$4 sm:$0xff]  }
 0x17c   : > { %3576 = vmatprep.subr.bf16.mxu1 %v5291_v12  ;;  %v5333_v12 = vld [vmem:[%s5822_s28 + $0xa84] ss:$36 sps:$4 sm:$0xff]  }
 0x17e   : > { %3524 = vmatpush2.bf16.msra.mxu0 %v5286_v13 }
 0x17f   : > { %3577 = vmatpush2.bf16.msra.mxu1 %v5289_v16  ;;  %3525 = vmatprep.subr.bf16.mxu0 %v5294_v17  ;;  %v3169_v16 = vadd.f32 %v3168_v45, %v3116_v63  ;;  %v3122_v17 = vadd.f32 %v6222_v14, %v6239_v47  ;;  %v5357_v63 = vld [vmem:[%s5822_s28 + $0x964] ss:$36 sps:$4 sm:$0xff]  }
 0x180   : > { %3578 = vmatprep.subr.bf16.mxu1 %v5297_v18 }
 0x181   : > { %v3175_v14 = vadd.f32 %v3174_v59, %v3122_v17  ;;  %v5373_v17 = vld [vmem:[%s5822_s28 + $0xd08] ss:$36 sps:$4 sm:$0xff]  }
 0x182   : > { %3526 = vmatpush2.bf16.msra.mxu0 %v5292_v20  ;;  %v3171_v20 = vadd.f32 %v3170_v54, %v3118_v6  ;;  %v5340_v54 = vld [vmem:[%s5822_s28 + $0x570] ss:$36 sps:$4 sm:$0xff]   ;;  %v5363_v6 = vld [vmem:[%s5822_s28 + $0x91c] ss:$36 sps:$4 sm:$0xff]  }
 0x183   : > { %3579 = vmatpush2.bf16.msra.mxu1 %v5295_v23  ;;  %3527 = vmatprep.subr.bf16.mxu0 %v5300_v24  ;;  %v5328_v24 = vld [vmem:[%s5822_s28 + $0x600] ss:$36 sps:$4 sm:$0xff]  }
 0x184   : > { %3580 = vmatprep.subr.bf16.mxu1 %v5303_v4  ;;  %v5331_v4 = vld [vmem:[%s5822_s28 + $0xa80] ss:$36 sps:$4 sm:$0xff]  }
 0x186   : > { %3528 = vmatpush2.bf16.msra.mxu0 %v5298_v26  ;;  %v3178_v26 = vpop.f32.mrf.mxu1 }
 0x187   : > { %3581 = vmatpush2.bf16.msra.mxu1 %v5301_v28  ;;  %3529 = vmatprep.subr.bf16.mxu0 %v5306_v5 }
 0x188   : > { %3582 = vmatprep.subr.bf16.mxu1 %v5309_v34  ;;  %v3126_v34 = vadd.f32 %v6246_v52, %v6239_v47  ;;  %v5342_v47 = vld [vmem:[%s5822_s28 + $0x574] ss:$36 sps:$4 sm:$0xff]  }
 0x18a   : > { %3530 = vmatpush2.bf16.msra.mxu0 %v5304_v38  ;;  %v3128_v38 = vadd.f32 %v3127_v60, %v6242_v48  ;;  %v3179_v52 = vadd.f32 %v3178_v26, %v3126_v34  ;;  %v5346_v60 = vld [vmem:[%s5822_s28 + $0x528] ss:$36 sps:$4 sm:$0xff]   ;;  %v5387_v26 = vld [vmem:[%s5822_s28 + $0xc7c] ss:$36 sps:$4 sm:$0xff]   ;;  %v5388_v34 = vld [vmem:[%s5822_s28 + $0x7b0] ss:$36 sps:$4 sm:$0xff]  }
 0x18b   : > { %3583 = vmatpush2.bf16.msra.mxu1 %v5307_v39  ;;  %3531 = vmatprep.subr.bf16.mxu0 %v5312_v43  ;;  %v5337_v43 = vld [vmem:[%s5822_s28 + $0xa38] ss:$36 sps:$4 sm:$0xff]  }
 0x18c   : > { %3584 = vmatprep.subr.bf16.mxu1 %v5315_v44  ;;  %v3180_v44 = vpop.f32.mrf.mxu1 }
 0x18e   : > { %3532 = vmatpush2.bf16.msra.mxu0 %v5310_v49  ;;  %v5345_v49 = vld [vmem:[%s5822_s28 + $0x9f4] ss:$36 sps:$4 sm:$0xff]  }
 0x18f   : > { %3585 = vmatpush2.bf16.msra.mxu1 %v5313_v51  ;;  %3607 = vmatprep.subr.bf16.mxu0 %v5318_v53  ;;  %v3181_v53 = vadd.f32 %v3180_v44, %v3128_v38  ;;  %v5399_v38 = vld [vmem:[%s5822_s28 + $0xbec] ss:$36 sps:$4 sm:$0xff]  }
 0x190   : > { %3660 = vmatprep.subr.bf16.mxu1 %v5321_v27 }
 0x191   : > { %v3217_v0 = vpop.f32.mrf.mxu0  ;;  %3534 = vmatmul.mubr.bf16.vlgmr.msra.gmra.mxu0 %v6258_v1 }
 0x192   : > { %3587 = vmatmul.mubr.bf16.vlgmr.msra.gmra.mxu1 %v6145_v33  ;;  %3608 = vmatpush1.bf16.msra.mxu0 %v5316_v57  ;;  %v3218_v13 = vadd.f32 %v3217_v0, %v3165_v2  ;;  %v6268_v33 = vld [vmem:[#allocation2 + $0x44] ss:$24 sps:$4 sm:$0xff]   ;;  %v5348_v57 = vld [vmem:[%s5822_s28 + $0x52c] ss:$36 sps:$4 sm:$0xff]   ;;  %v6324_v21 = vpop.f32.mrf.mxu1 }
 0x193   : > { %3661 = vmatpush1.bf16.msra.mxu1 %v5319_v58  ;;  %v3219_v10 = vpop.f32.mrf.mxu0  ;;  %3609 = vmatprep.subr.bf16.mxu0 %v5324_v61  ;;  %v5349_v61 = vld [vmem:[%s5822_s28 + $0x9a8] ss:$36 sps:$4 sm:$0xff]   ;;  %v5352_v0 = vld [vmem:[%s5822_s28 + $0x4e0] ss:$36 sps:$4 sm:$0xff]  }
 0x194   : > { %3662 = vmatprep.subr.bf16.mxu1 %v5327_v62  ;;  %v3220_v15 = vadd.f32 %v3219_v10, %v3167_v3  ;;  %3543 = vmatprep.mubr.bf16.mxu0 %v6268_v33  ;;  %v5354_v62 = vld [vmem:[%s5822_s28 + $0x4e4] ss:$36 sps:$4 sm:$0xff]   ;;  %v5360_v3 = vld [vmem:[%s5822_s28 + $0x49c] ss:$36 sps:$4 sm:$0xff]   ;;  %v5369_v10 = vld [vmem:[%s5822_s28 + $0xd54] ss:$36 sps:$4 sm:$0xff]  }
 0x195   : > { %3596 = vmatprep.mubr.bf16.mxu1 %v6156_v19  ;;  %v3221_v18 = vpop.f32.mrf.mxu0  ;;  %v5336_v19 = vld [vmem:[%s5822_s28 + $0x5bc] ss:$36 sps:$4 sm:$0xff]  }
 0x196   : > { %v4606_v23 = vpack.c.bf16 %v3220_v15, %v3218_v13  ;;  %3610 = vmatpush1.bf16.msra.mxu0 %v5322_v7  ;;  %v3222_v32 = vadd.f32 %v3221_v18, %v3169_v16  ;;  %v5355_v2 = vld [vmem:[%s5822_s28 + $0x960] ss:$36 sps:$4 sm:$0xff]   ;;  %v5358_v7 = vld [vmem:[%s5822_s28 + $0x498] ss:$36 sps:$4 sm:$0xff]   ;;  %v5372_v13 = vld [vmem:[%s5822_s28 + $0x88c] ss:$36 sps:$4 sm:$0xff]  }
 0x197   : > { %3663 = vmatpush1.bf16.msra.mxu1 %v5325_v8  ;;  %v3223_v28 = vpop.f32.mrf.mxu0  ;;  %3611 = vmatprep.subr.bf16.mxu0 %v5330_v11  ;;  %v5361_v8 = vld [vmem:[%s5822_s28 + $0x918] ss:$36 sps:$4 sm:$0xff]   ;;  %v5364_v11 = vld [vmem:[%s5822_s28 + $0x8d0] ss:$36 sps:$4 sm:$0xff]   ;;  %v5370_v16 = vld [vmem:[%s5822_s28 + $0x888] ss:$36 sps:$4 sm:$0xff]  }
 0x198   : > { %3664 = vmatprep.subr.bf16.mxu1 %v5333_v12  ;;  %3972 = vst [vmem:[%s6281_s27] sm:$0xff] %v4606_v23  ;;  %v3224_v5 = vadd.f32 %v3223_v28, %v3171_v20  ;;  %v5367_v12 = vld [vmem:[%s5822_s28 + $0xd50] ss:$36 sps:$4 sm:$0xff]   ;;  %v5378_v18 = vld [vmem:[%s5822_s28 + $0x844] ss:$36 sps:$4 sm:$0xff]   ;;  %v6330_v28 = vpop.f32.mrf.mxu1 }
 0x199   : > { %v3227_v35 = vpop.f32.mrf.mxu0  ;;  %3544 = vmatmul.mubr.bf16.gmra.mxu0 %v6286_v29  ;;  %v5375_v15 = vld [vmem:[%s5822_s28 + $0xd0c] ss:$36 sps:$4 sm:$0xff]   ;;  %v5381_v20 = vld [vmem:[%s5822_s28 + $0xcc4] ss:$36 sps:$4 sm:$0xff]  }
 0x19a   : > { %3597 = vmatmul.mubr.bf16.gmra.mxu1 %v6169_v41  ;;  %v4611_v39 = vpack.c.bf16 %v3224_v5, %v3222_v32  ;;  %3612 = vmatpush1.bf16.msra.mxu0 %v5328_v24  ;;  %v3228_v51 = vadd.f32 %v3227_v35, %v3175_v14  ;;  %v5376_v23 = vld [vmem:[%s5822_s28 + $0x840] ss:$36 sps:$4 sm:$0xff]   ;;  %v5390_v32 = vld [vmem:[%s5822_s28 + $0x7b4] ss:$36 sps:$4 sm:$0xff]   ;;  %v6336_v14 = vpop.f32.mrf.mxu1 }
 0x19b   : > { %3665 = vmatpush1.bf16.msra.mxu1 %v5331_v4  ;;  %v3229_v45 = vpop.f32.mrf.mxu0  ;;  %3613 = vmatprep.subr.bf16.mxu0 %v5336_v19  ;;  %v5379_v24 = vld [vmem:[%s5822_s28 + $0xcc0] ss:$36 sps:$4 sm:$0xff]   ;;  %v5382_v19 = vld [vmem:[%s5822_s28 + $0x7f8] ss:$36 sps:$4 sm:$0xff]   ;;  %v5391_v35 = vld [vmem:[%s5822_s28 + $0xc30] ss:$36 sps:$4 sm:$0xff]  }
 0x19c   : > { %3666 = vmatprep.subr.bf16.mxu1 %v5339_v30  ;;  %3977 = vst [vmem:[%s6281_s27 + $0x24] sm:$0xff] %v4611_v39  ;;  %v3230_v41 = vadd.f32 %v3229_v45, %v3177_v37  ;;  %3639 = vmatprep.mubr.bf16.mxu0 %v6089_v31  ;;  %v5351_v31 = vld [vmem:[%s5822_s28 + $0x9ac] ss:$36 sps:$4 sm:$0xff]   ;;  %v5384_v4 = vld [vmem:[%s5822_s28 + $0x7fc] ss:$36 sps:$4 sm:$0xff]   ;;  %v3276_v39 = vpop.f32.mrf.mxu1 }
 0x19d   : > { %3692 = vmatprep.mubr.bf16.mxu1 %v6178_v46  ;;  %v3231_v48 = vpop.f32.mrf.mxu0  ;;  %v5385_v30 = vld [vmem:[%s5822_s28 + $0xc78] ss:$36 sps:$4 sm:$0xff]   ;;  %v5396_v37 = vld [vmem:[%s5822_s28 + $0x76c] ss:$36 sps:$4 sm:$0xff]   ;;  %v5402_v45 = vld [vmem:[%s5822_s28 + $0x724] ss:$36 sps:$4 sm:$0xff]  }
 0x19e   : > { %v4616_v27 = vpack.c.bf16 %v3230_v41, %v3228_v51  ;;  %3614 = vmatpush1.bf16.msra.mxu0 %v5334_v40  ;;  %v3232_v46 = vadd.f32 %v3231_v48, %v3179_v52  ;;  %v5393_v5 = vld [vmem:[%s5822_s28 + $0xc34] ss:$36 sps:$4 sm:$0xff]   ;;  %v5394_v40 = vld [vmem:[%s5822_s28 + $0x768] ss:$36 sps:$4 sm:$0xff]   ;;  %v6344_v44 = vpop.f32.mrf.mxu1  ;;  %v5403_v51 = vld [vmem:[%s5822_s28 + $0xba0] ss:$36 sps:$4 sm:$0xff]  }
 0x19f   : > { %3667 = vmatpush1.bf16.msra.mxu1 %v5337_v43  ;;  %v3233_v56 = vpop.f32.mrf.mxu0  ;;  %3615 = vmatprep.subr.bf16.mxu0 %v5342_v47  ;;  %v5397_v43 = vld [vmem:[%s5822_s28 + $0xbe8] ss:$36 sps:$4 sm:$0xff]   ;;  %v5408_v48 = vld [vmem:[%s5822_s28 + $0x6dc] ss:$36 sps:$4 sm:$0xff]  }
 0x1a0   : > { %3668 = vmatprep.subr.bf16.mxu1 %v5345_v49  ;;  %3982 = vst [vmem:[%s6281_s27 + $0x48] sm:$0xff] %v4616_v27  ;;  %v3234_v58 = vadd.f32 %v3233_v56, %v3181_v53  ;;  %v5405_v47 = vld [vmem:[%s5822_s28 + $0xba4] ss:$36 sps:$4 sm:$0xff]   ;;  %v6350_v41 = vpop.f32.mrf.mxu1  ;;  %v5411_v52 = vld [vmem:[%s5822_s28 + $0xb5c] ss:$36 sps:$4 sm:$0xff]   ;;  %v774_v53 = vsub.s32 2, %v6162_v25 }
 0x1a1   : > { %v5400_v49 = vld [vmem:[%s5822_s28 + $0x720] ss:$36 sps:$4 sm:$0xff]   ;;  %v778_v27 = vsub.s32 3, %v6162_v25 }
 0x1a2   : > { %v4621_v59 = vpack.c.bf16 %v3234_v58, %v3232_v46  ;;  %3616 = vmatpush1.bf16.msra.mxu0 %v5340_v54  ;;  %v5406_v54 = vld [vmem:[%s5822_s28 + $0x6d8] ss:$36 sps:$4 sm:$0xff]   ;;  %v6358_v56 = vpop.f32.mrf.mxu1  ;;  %v6363_v46 = vrot.slane %v6234_v50, %v774_v53 }
 0x1a3   : > { %3669 = vmatpush1.bf16.msra.mxu1 %v5343_v55  ;;  %3617 = vmatprep.subr.bf16.mxu0 %v5348_v57  ;;  %v5409_v55 = vld [vmem:[%s5822_s28 + $0xb58] ss:$36 sps:$4 sm:$0xff]   ;;  %v6366_v58 = vrot.slane %v6234_v50, %v778_v27 }
 0x1a4   : > { %3670 = vmatprep.subr.bf16.mxu1 %v5351_v31  ;;  %3987 = vst [vmem:[%s6281_s27 + $0x6c] sm:$0xff] %v4621_v59  ;;  %v5412_v57 = vld [vmem:[%s5822_s28 + $0x458] ss:$36 sps:$4 sm:$0xff]  }
 0x1a5   : > { %v5413_v31 = vld [vmem:[%s5822_s28 + $0x8d8] ss:$36 sps:$4 sm:$0xff]  }
 0x1a6   : > { %3618 = vmatpush1.bf16.msra.mxu0 %v5346_v60  ;;  %v5414_v59 = vld [vmem:[%s5822_s28 + $0x218] ss:$36 sps:$4 sm:$0xff]  }
 0x1a7   : > { %3671 = vmatpush1.bf16.msra.mxu1 %v5349_v61  ;;  %3619 = vmatprep.subr.bf16.mxu0 %v5354_v62  ;;  %v5415_v60 = vld [vmem:[%s5822_s28 + $0x698] ss:$36 sps:$4 sm:$0xff]   ;;  %v6370_v61 = vpop.f32.mrf.mxu1  ;;  %v5416_v62 = vld [vmem:[%s5822_s28 + $0x410] ss:$36 sps:$4 sm:$0xff]  }
 0x1a8   : > { %3672 = vmatprep.subr.bf16.mxu1 %v5357_v63  ;;  %v5417_v63 = vld [vmem:[%s5822_s28 + $0x890] ss:$36 sps:$4 sm:$0xff]   ;;  %v3287_v53 = vadd.f32 %v6370_v61, %v6366_v58 }
 0x1a9   : > { %v5433_v61 = vld [vmem:[%s5822_s28 + $0x770] ss:$36 sps:$4 sm:$0xff]  }
 0x1aa   : > { %3620 = vmatpush1.bf16.msra.mxu0 %v5352_v0  ;;  %v3271_v0 = vadd.f32 %v6324_v21, %v6363_v46 }
 0x1ab   : > { %3673 = vmatpush1.bf16.msra.mxu1 %v5355_v2  ;;  %3621 = vmatprep.subr.bf16.mxu0 %v5360_v3 }
 0x1ac   : > { %3674 = vmatprep.subr.bf16.mxu1 %v5363_v6  ;;  %v3273_v6 = vadd.f32 %v6330_v28, %v6366_v58 }
 0x1ae   : > { %3622 = vmatpush1.bf16.msra.mxu0 %v5358_v7 }
 0x1af   : > { %3675 = vmatpush1.bf16.msra.mxu1 %v5361_v8  ;;  %3623 = vmatprep.subr.bf16.mxu0 %v5366_v9  ;;  %v5418_v8 = vld [vmem:[%s5822_s28 + $0x1d0] ss:$36 sps:$4 sm:$0xff]  }
 0x1b0   : > { %3676 = vmatprep.subr.bf16.mxu1 %v5369_v10  ;;  %v5419_v9 = vld [vmem:[%s5822_s28 + $0x650] ss:$36 sps:$4 sm:$0xff]  }
 0x1b2   : > { %3624 = vmatpush2.bf16.msra.mxu0 %v5364_v11 }
 0x1b3   : > { %3677 = vmatpush2.bf16.msra.mxu1 %v5367_v12  ;;  %3625 = vmatprep.subr.bf16.mxu0 %v5372_v13  ;;  %v5420_v12 = vld [vmem:[%s5822_s28 + $0x3c8] ss:$36 sps:$4 sm:$0xff]  }
 0x1b4   : > { %3678 = vmatprep.subr.bf16.mxu1 %v5375_v15  ;;  %v5421_v13 = vld [vmem:[%s5822_s28 + $0x848] ss:$36 sps:$4 sm:$0xff]  }
 0x1b6   : > { %3626 = vmatpush2.bf16.msra.mxu0 %v5370_v16  ;;  %v3277_v16 = vadd.f32 %v3276_v39, %v6366_v58 }
 0x1b7   : > { %3679 = vmatpush2.bf16.msra.mxu1 %v5373_v17  ;;  %3627 = vmatprep.subr.bf16.mxu0 %v5378_v18 }
 0x1b8   : > { %3680 = vmatprep.subr.bf16.mxu1 %v5381_v20 }
 0x1ba   : > { %3628 = vmatpush2.bf16.msra.mxu0 %v5376_v23 }
 0x1bb   : > { %3681 = vmatpush2.bf16.msra.mxu1 %v5379_v24  ;;  %3629 = vmatprep.subr.bf16.mxu0 %v5384_v4  ;;  %v5422_v24 = vld [vmem:[%s5822_s28 + $0x188] ss:$36 sps:$4 sm:$0xff]  }
 0x1bc   : > { %3682 = vmatprep.subr.bf16.mxu1 %v5387_v26  ;;  %v5423_v4 = vld [vmem:[%s5822_s28 + $0x608] ss:$36 sps:$4 sm:$0xff]  }
 0x1be   : > { %3630 = vmatpush2.bf16.msra.mxu0 %v5382_v19  ;;  %v5425_v19 = vld [vmem:[%s5822_s28 + $0x800] ss:$36 sps:$4 sm:$0xff]  }
 0x1bf   : > { %3683 = vmatpush2.bf16.msra.mxu1 %v5385_v30  ;;  %3631 = vmatprep.subr.bf16.mxu0 %v5390_v32  ;;  %v3281_v30 = vadd.f32 %v6344_v44, %v6363_v46 }
 0x1c0   : > { %3684 = vmatprep.subr.bf16.mxu1 %v5393_v5 }
 0x1c2   : > { %3632 = vmatpush2.bf16.msra.mxu0 %v5388_v34 }
 0x1c3   : > { %3685 = vmatpush2.bf16.msra.mxu1 %v5391_v35  ;;  %3633 = vmatprep.subr.bf16.mxu0 %v5396_v37 }
 0x1c4   : > { %3686 = vmatprep.subr.bf16.mxu1 %v5399_v38 }
 0x1c6   : > { %3634 = vmatpush2.bf16.msra.mxu0 %v5394_v40  ;;  %v5426_v40 = vld [vmem:[%s5822_s28 + $0x140] ss:$36 sps:$4 sm:$0xff]  }
 0x1c7   : > { %3687 = vmatpush2.bf16.msra.mxu1 %v5397_v43  ;;  %3635 = vmatprep.subr.bf16.mxu0 %v5402_v45  ;;  %v5427_v43 = vld [vmem:[%s5822_s28 + $0x5c0] ss:$36 sps:$4 sm:$0xff]  }
 0x1c8   : > { %3688 = vmatprep.subr.bf16.mxu1 %v5405_v47  ;;  %v5428_v47 = vld [vmem:[%s5822_s28 + $0x338] ss:$36 sps:$4 sm:$0xff]  }
 0x1ca   : > { %3636 = vmatpush2.bf16.msra.mxu0 %v5400_v49  ;;  %v5429_v49 = vld [vmem:[%s5822_s28 + $0x7b8] ss:$36 sps:$4 sm:$0xff]  }
 0x1cb   : > { %3689 = vmatpush2.bf16.msra.mxu1 %v5403_v51  ;;  %3637 = vmatprep.subr.bf16.mxu0 %v5408_v48  ;;  %v5472_v48 = vld [vmem:[#allocation2 + $0x4] ss:$24 sps:$4 sm:$0xff]  }
 0x1cc   : > { %3690 = vmatprep.subr.bf16.mxu1 %v5411_v52  ;;  %v5473_v52 = vld [vmem:[#allocation2 + $0xc] ss:$24 sps:$4 sm:$0xff]  }
 0x1ce   : > { %3638 = vmatpush2.bf16.msra.mxu0 %v5406_v54 }
 0x1cf   : > { %3691 = vmatpush2.bf16.msra.mxu1 %v5409_v55  ;;  %4627 = vmatprep.subr.bf16.mxu0 %v5412_v57 }
 0x1d0   : > { %4655 = vmatprep.subr.bf16.mxu1 %v5413_v31  ;;  %v5430_v31 = vld [vmem:[%s5822_s28 + $0xf8] ss:$36 sps:$4 sm:$0xff]  }
 0x1d1   : > { %v3323_v2 = vpop.f32.mrf.mxu0  ;;  %3640 = vmatmul.mubr.bf16.vlgmr.msra.gmra.mxu0 %v6148_v22  ;;  %v3275_v22 = vadd.f32 %v6336_v14, %v6363_v46  ;;  %v3283_v14 = vadd.f32 %v6350_v41, %v6366_v58  ;;  %v5432_v58 = vld [vmem:[%s5822_s28 + $0x2f0] ss:$36 sps:$4 sm:$0xff]  }
 0x1d2   : > { %v3376_v3 = vpop.f32.mrf.mxu1  ;;  %3693 = vmatmul.mubr.bf16.vlgmr.msra.gmra.mxu1 %v6258_v1  ;;  %v3324_v7 = vadd.f32 %v3323_v2, %v3271_v0  ;;  %4628 = vmatpush3.bf16.msra.mxu0 %v5414_v59 }
 0x1d3   : > { %4656 = vmatpush3.bf16.msra.mxu1 %v5415_v60  ;;  %v3325_v10 = vpop.f32.mrf.mxu0  ;;  %4629 = vmatprep.subr.bf16.mxu0 %v5416_v62 }
 0x1d4   : > { %v3378_v11 = vpop.f32.mrf.mxu1  ;;  %4657 = vmatprep.subr.bf16.mxu1 %v5417_v63  ;;  %v3326_v15 = vadd.f32 %v3325_v10, %v3273_v6  ;;  %3649 = vmatprep.mubr.bf16.mxu0 %v6159_v36  ;;  %v3377_v20 = vadd.f32 %v3376_v3, %v3324_v7  ;;  %v5424_v36 = vld [vmem:[%s5822_s28 + $0x380] ss:$36 sps:$4 sm:$0xff]   ;;  %v5434_v3 = vld [vmem:[%s5822_s28 + $0xb0] ss:$36 sps:$4 sm:$0xff]   ;;  %v5436_v7 = vld [vmem:[%s5822_s28 + $0x2a8] ss:$36 sps:$4 sm:$0xff]  }
 0x1d5   : > { %3702 = vmatprep.mubr.bf16.mxu1 %v6268_v33  ;;  %v3327_v17 = vpop.f32.mrf.mxu0  ;;  %v5435_v6 = vld [vmem:[%s5822_s28 + $0x530] ss:$36 sps:$4 sm:$0xff]   ;;  %v5438_v10 = vld [vmem:[%s5822_s28 + $0x68] ss:$36 sps:$4 sm:$0xff]  }
 0x1d6   : > { %v3380_v18 = vpop.f32.mrf.mxu1  ;;  %v3379_v21 = vadd.f32 %v3378_v11, %v3326_v15  ;;  %v3328_v23 = vadd.f32 %v3327_v17, %v3275_v22  ;;  %4630 = vmatpush3.bf16.msra.mxu0 %v5418_v8  ;;  %v5437_v8 = vld [vmem:[%s5822_s28 + $0x728] ss:$36 sps:$4 sm:$0xff]   ;;  %v5442_v22 = vld [vmem:[%s5822_s28 + $0x20] ss:$36 sps:$4 sm:$0xff]   ;;  %v5445_v17 = vld [vmem:[%s5822_s28 + $0xb18] ss:$36 sps:$4 sm:$0xff]  }
 0x1d7   : > { %4658 = vmatpush3.bf16.msra.mxu1 %v5419_v9  ;;  %v3329_v26 = vpop.f32.mrf.mxu0  ;;  %4631 = vmatprep.subr.bf16.mxu0 %v5420_v12  ;;  %v5439_v11 = vld [vmem:[%s5822_s28 + $0x4e8] ss:$36 sps:$4 sm:$0xff]   ;;  %v5440_v12 = vld [vmem:[%s5822_s28 + $0x260] ss:$36 sps:$4 sm:$0xff]  }
 0x1d8   : > { %v3382_v28 = vpop.f32.mrf.mxu1  ;;  %4659 = vmatprep.subr.bf16.mxu1 %v5421_v13  ;;  %v4607_v32 = vpack.c.bf16 %v3379_v21, %v3377_v20  ;;  %v3330_v5 = vadd.f32 %v3329_v26, %v3277_v16  ;;  %v3381_v37 = vadd.f32 %v3380_v18, %v3328_v23  ;;  %v5441_v13 = vld [vmem:[%s5822_s28 + $0x6e0] ss:$36 sps:$4 sm:$0xff]   ;;  %v5444_v16 = vld [vmem:[%s5822_s28 + $0xd58] ss:$36 sps:$4 sm:$0xff]   ;;  %v5446_v18 = vld [vmem:[%s5822_s28 + $0xd10] ss:$36 sps:$4 sm:$0xff]  }
 0x1d9   : > { %v3333_v34 = vpop.f32.mrf.mxu0  ;;  %3650 = vmatmul.mubr.bf16.gmra.mxu0 %v6172_v42  ;;  %v3285_v42 = vadd.f32 %v6358_v56, %v6363_v46  ;;  %v5431_v46 = vld [vmem:[%s5822_s28 + $0x578] ss:$36 sps:$4 sm:$0xff]   ;;  %v5443_v15 = vld [vmem:[%s5822_s28 + $0x4a0] ss:$36 sps:$4 sm:$0xff]   ;;  %v5447_v23 = vld [vmem:[%s5822_s28 + $0xad0] ss:$36 sps:$4 sm:$0xff]  }
 0x1da   : > { %v3386_v35 = vpop.f32.mrf.mxu1  ;;  %3703 = vmatmul.mubr.bf16.gmra.mxu1 %v6286_v29  ;;  %3973 = vst [vmem:[%s6281_s27 + $0x8] sm:$0xff] %v4607_v32  ;;  %v3383_v38 = vadd.f32 %v3382_v28, %v3330_v5  ;;  %v3334_v39 = vadd.f32 %v3333_v34, %v3281_v30  ;;  %4632 = vmatpush3.bf16.msra.mxu0 %v5422_v24  ;;  %v5474_v20 = vld [vmem:[#allocation2] ss:$24 sps:$4 sm:$0xff]   ;;  %v5448_v24 = vld [vmem:[%s5822_s28 + $0xcc8] ss:$36 sps:$4 sm:$0xff]  }
 0x1db   : > { %4660 = vmatpush3.bf16.msra.mxu1 %v5423_v4  ;;  %v3335_v44 = vpop.f32.mrf.mxu0  ;;  %4633 = vmatprep.subr.bf16.mxu0 %v5424_v36  ;;  %v5475_v21 = vld [vmem:[#allocation2 + $0x8] ss:$24 sps:$4 sm:$0xff]   ;;  %v5476_v4 = vld [vmem:[#allocation2 + $0x34] ss:$24 sps:$4 sm:$0xff]   ;;  %v5479_v30 = vld [vmem:[#allocation2 + $0x38] ss:$24 sps:$4 sm:$0xff]  }
 0x1dc   : > { %v3388_v45 = vpop.f32.mrf.mxu1  ;;  %4661 = vmatprep.subr.bf16.mxu1 %v5425_v19  ;;  %v4612_v51 = vpack.c.bf16 %v3383_v38, %v3381_v37  ;;  %v3336_v41 = vadd.f32 %v3335_v44, %v3283_v14  ;;  %3745 = vmatprep.mubr.bf16.mxu0 %v5472_v48  ;;  %v3387_v55 = vadd.f32 %v3386_v35, %v3334_v39  ;;  %v5477_v26 = vld [vmem:[#allocation2 + $0x3c] ss:$24 sps:$4 sm:$0xff]   ;;  %v5449_v28 = vld [vmem:[%s5822_s28 + $0xa88] ss:$36 sps:$4 sm:$0xff]   ;;  %v5450_v36 = vld [vmem:[%s5822_s28 + $0xc80] ss:$36 sps:$4 sm:$0xff]  }
 0x1dd   : > { %3794 = vmatprep.mubr.bf16.mxu1 %v5473_v52  ;;  %v3337_v27 = vpop.f32.mrf.mxu0  ;;  %v5478_v19 = vld [vmem:[#allocation2 + $0x30] ss:$24 sps:$4 sm:$0xff]   ;;  %v5451_v32 = vld [vmem:[%s5822_s28 + $0xa40] ss:$36 sps:$4 sm:$0xff]   ;;  %v5452_v5 = vld [vmem:[%s5822_s28 + $0xc38] ss:$36 sps:$4 sm:$0xff]  }
 0x1de   : > { %v3390_v54 = vpop.f32.mrf.mxu1  ;;  %3978 = vst [vmem:[%s6281_s27 + $0x2c] sm:$0xff] %v4612_v51  ;;  %v3338_v57 = vadd.f32 %v3337_v27, %v3285_v42  ;;  %v3389_v56 = vadd.f32 %v3388_v45, %v3336_v41  ;;  %4634 = vmatpush3.bf16.msra.mxu0 %v5426_v40  ;;  %v5480_v14 = vld [vmem:[#allocation2 + $0x14] ss:$24 sps:$4 sm:$0xff]   ;;  %v5453_v34 = vld [vmem:[%s5822_s28 + $0x9f8] ss:$36 sps:$4 sm:$0xff]   ;;  %v782_v41 = vsub.s32 4, %v6162_v25 }
 0x1df   : > { %4662 = vmatpush3.bf16.msra.mxu1 %v5427_v43  ;;  %v3339_v59 = vpop.f32.mrf.mxu0  ;;  %4635 = vmatprep.subr.bf16.mxu0 %v5428_v47  ;;  %v5454_v35 = vld [vmem:[%s5822_s28 + $0xbf0] ss:$36 sps:$4 sm:$0xff]   ;;  %v5456_v38 = vld [vmem:[%s5822_s28 + $0xba8] ss:$36 sps:$4 sm:$0xff]   ;;  %v5459_v40 = vld [vmem:[%s5822_s28 + $0x920] ss:$36 sps:$4 sm:$0xff]  }
 0x1e0   : > { %v3392_v60 = vpop.f32.mrf.mxu1  ;;  %4663 = vmatprep.subr.bf16.mxu1 %v5429_v49  ;;  %v4617_v62 = vpack.c.bf16 %v3389_v56, %v3387_v55  ;;  %v3340_v63 = vadd.f32 %v3339_v59, %v3287_v53  ;;  %v3391_v0 = vadd.f32 %v3390_v54, %v3338_v57  ;;  %v5455_v37 = vld [vmem:[%s5822_s28 + $0x9b0] ss:$36 sps:$4 sm:$0xff]   ;;  %v5457_v39 = vld [vmem:[%s5822_s28 + $0x968] ss:$36 sps:$4 sm:$0xff]   ;;  %v786_v48 = vsub.s32 5, %v6162_v25 }
 0x1e1   : > { %v783_v27 = vrot.slane %v6234_v50, %v782_v41 }
 0x1e2   : > { %3983 = vst [vmem:[%s6281_s27 + $0x50] sm:$0xff] %v4617_v62  ;;  %v3393_v2 = vadd.f32 %v3392_v60, %v3340_v63  ;;  %4636 = vmatpush3.bf16.msra.mxu0 %v5430_v31  ;;  %v787_v54 = vrot.slane %v6234_v50, %v786_v48 }
 0x1e3   : > { %4664 = vmatpush3.bf16.msra.mxu1 %v5431_v46  ;;  %4637 = vmatprep.subr.bf16.mxu0 %v5432_v58 }
 0x1e4   : > { %4665 = vmatprep.subr.bf16.mxu1 %v5433_v61  ;;  %v4622_v9 = vpack.c.bf16 %v3393_v2, %v3391_v0 }
 0x1e6   : > { %3988 = vst [vmem:[%s6281_s27 + $0x74] sm:$0xff] %v4622_v9  ;;  %4638 = vmatpush3.bf16.msra.mxu0 %v5434_v3 }
 0x1e7   : > { %4666 = vmatpush3.bf16.msra.mxu1 %v5435_v6  ;;  %4639 = vmatprep.subr.bf16.mxu0 %v5436_v7 }
 0x1e8   : > { %4667 = vmatprep.subr.bf16.mxu1 %v5437_v8 }
 0x1ea   : > { %4640 = vmatpush3.bf16.msra.mxu0 %v5438_v10 }
 0x1eb   : > { %4668 = vmatpush3.bf16.msra.mxu1 %v5439_v11  ;;  %4641 = vmatprep.subr.bf16.mxu0 %v5440_v12 }
 0x1ec   : > { %4669 = vmatprep.subr.bf16.mxu1 %v5441_v13 }
 0x1ee   : > { %4642 = vmatpush3.bf16.msra.mxu0 %v5442_v22 }
 0x1ef   : > { %4670 = vmatpush3.bf16.msra.mxu1 %v5443_v15  ;;  %4683 = vmatprep.subr.bf16.mxu0 %v5444_v16 }
 0x1f0   : > { %4711 = vmatprep.subr.bf16.mxu1 %v5444_v16 }
 0x1f1   : > { %3746 = vmatmul.mubr.bf16.vlgmr.msra.gmra.mxu0 %v5474_v20 }
 0x1f2   : > { %3795 = vmatmul.mubr.bf16.vlgmr.msra.gmra.mxu1 %v5475_v21  ;;  %4684 = vmatpush3.bf16.msra.mxu0 %v5445_v17 }
 0x1f3   : > { %4719 = vmatpush3.bf16.msra.mxu1 %v5445_v17  ;;  %4685 = vmatprep.subr.bf16.mxu0 %v5446_v18 }
 0x1f4   : > { %4712 = vmatprep.subr.bf16.mxu1 %v5446_v18  ;;  %3753 = vmatprep.mubr.bf16.mxu0 %v5476_v4 }
 0x1f5   : > { %3802 = vmatprep.mubr.bf16.mxu1 %v5477_v26 }
 0x1f6   : > { %4686 = vmatpush3.bf16.msra.mxu0 %v5447_v23 }
 0x1f7   : > { %4720 = vmatpush3.bf16.msra.mxu1 %v5447_v23  ;;  %4687 = vmatprep.subr.bf16.mxu0 %v5448_v24 }
 0x1f8   : > { %4713 = vmatprep.subr.bf16.mxu1 %v5448_v24 }
 0x1f9   : > { %3754 = vmatmul.mubr.bf16.gmra.mxu0 %v5478_v19 }
 0x1fa   : > { %3803 = vmatmul.mubr.bf16.gmra.mxu1 %v5479_v30  ;;  %4688 = vmatpush3.bf16.msra.mxu0 %v5449_v28 }
 0x1fb   : > { %4721 = vmatpush3.bf16.msra.mxu1 %v5449_v28  ;;  %4689 = vmatprep.subr.bf16.mxu0 %v5450_v36 }
 0x1fc   : > { %4714 = vmatprep.subr.bf16.mxu1 %v5450_v36  ;;  %3843 = vmatprep.mubr.bf16.mxu0 %v5480_v14 }
 0x1fd   : > { %3851 = vmatprep.mubr.bf16.mxu1 %v6268_v33  ;;  %v5458_v33 = vld [vmem:[%s5822_s28 + $0xb60] ss:$36 sps:$4 sm:$0xff]  }
 0x1fe   : > { %4690 = vmatpush3.bf16.msra.mxu0 %v5451_v32 }
 0x1ff   : > { %4722 = vmatpush3.bf16.msra.mxu1 %v5451_v32  ;;  %4691 = vmatprep.subr.bf16.mxu0 %v5452_v5 }
 0x200   : > { %4715 = vmatprep.subr.bf16.mxu1 %v5452_v5 }
 0x202   : > { %4692 = vmatpush3.bf16.msra.mxu0 %v5453_v34 }
 0x203   : > { %4723 = vmatpush3.bf16.msra.mxu1 %v5453_v34  ;;  %4693 = vmatprep.subr.bf16.mxu0 %v5454_v35 }
 0x204   : > { %4716 = vmatprep.subr.bf16.mxu1 %v5454_v35 }
 0x206   : > { %4694 = vmatpush3.bf16.msra.mxu0 %v5455_v37 }
 0x207   : > { %4724 = vmatpush3.bf16.msra.mxu1 %v5455_v37  ;;  %4695 = vmatprep.subr.bf16.mxu0 %v5456_v38 }
 0x208   : > { %4717 = vmatprep.subr.bf16.mxu1 %v5456_v38 }
 0x20a   : > { %4696 = vmatpush3.bf16.msra.mxu0 %v5457_v39 }
 0x20b   : > { %4725 = vmatpush3.bf16.msra.mxu1 %v5457_v39  ;;  %4697 = vmatprep.subr.bf16.mxu0 %v5458_v33 }
 0x20c   : > { %4718 = vmatprep.subr.bf16.mxu1 %v5458_v33 }
 0x20e   : > { %4698 = vmatpush3.bf16.msra.mxu0 %v5459_v40 }
 0x20f   : > { %4726 = vmatpush3.bf16.msra.mxu1 %v5459_v40 }
 0x211   : > { %3844 = vmatmul.mubr.bf16.vlgmr.msra.gmra.mxu0 %v6258_v1  ;;  %v3429_v43 = vpop.f32.mrf.mxu0 }
 0x212   : > { %3852 = vmatmul.mubr.bf16.vlgmr.msra.gmra.mxu1 %v6286_v29  ;;  %v3482_v47 = vpop.f32.mrf.mxu1  ;;  %v3430_v29 = vadd.f32 %v3429_v43, %v783_v27  ;;  %v790_v43 = vsub.s32 6, %v6162_v25 }
 0x213   : > { %v3431_v44 = vpop.f32.mrf.mxu0 }
 0x214   : > { %v3484_v51 = vpop.f32.mrf.mxu1  ;;  %v3432_v57 = vadd.f32 %v3431_v44, %v787_v54  ;;  %v3483_v59 = vadd.f32 %v3482_v47, %v3430_v29  ;;  %v794_v44 = vsub.s32 7, %v6162_v25  ;;  %v791_v47 = vrot.slane %v6234_v50, %v790_v43 }
 0x215   : > { %v3433_v45 = vpop.f32.mrf.mxu0 }
 0x216   : > { %v3486_v53 = vpop.f32.mrf.mxu1  ;;  %v3485_v60 = vadd.f32 %v3484_v51, %v3432_v57  ;;  %v3434_v58 = vadd.f32 %v3433_v45, %v783_v27 }
 0x217   : > { %v3435_v49 = vpop.f32.mrf.mxu0 }
 0x218   : > { %v3488_v55 = vpop.f32.mrf.mxu1  ;;  %v3436_v61 = vadd.f32 %v3435_v49, %v787_v54  ;;  %v3487_v7 = vadd.f32 %v3486_v53, %v3434_v58  ;;  %v795_v49 = vrot.slane %v6234_v50, %v794_v44 }
 0x219   : > { %v3439_v42 = vpop.f32.mrf.mxu0 }
 0x21a   : > { %v3492_v56 = vpop.f32.mrf.mxu1  ;;  %v3440_v3 = vadd.f32 %v3439_v42, %v783_v27  ;;  %v3489_v8 = vadd.f32 %v3488_v55, %v3436_v61 }
 0x21b   : > { %v3441_v52 = vpop.f32.mrf.mxu0 }
 0x21c   : > { %v3494_v62 = vpop.f32.mrf.mxu1  ;;  %v3442_v9 = vadd.f32 %v3441_v52, %v787_v54  ;;  %v3493_v15 = vadd.f32 %v3492_v56, %v3440_v3 }
 0x21d   : > { %v3443_v1 = vpop.f32.mrf.mxu0 }
 0x21e   : > { %v3496_v11 = vpop.f32.mrf.mxu1  ;;  %v3444_v17 = vadd.f32 %v3443_v1, %v783_v27  ;;  %v3495_v18 = vadd.f32 %v3494_v62, %v3442_v9 }
 0x21f   : > { %v3445_v31 = vpop.f32.mrf.mxu0 }
 0x220   : > { %v3446_v20 = vadd.f32 %v3445_v31, %v787_v54  ;;  %v3498_v23 = vpop.f32.mrf.mxu1  ;;  %v3497_v36 = vadd.f32 %v3496_v11, %v3444_v17 }
 0x222   : > { %v3499_v19 = vadd.f32 %v3498_v23, %v3446_v20 }
 0x251   : > { %v3535_v46 = vpop.f32.mrf.mxu0 }
 0x252   : > { %v3536_v0 = vadd.f32 %v3535_v46, %v3483_v59  ;;  %v3588_v35 = vpop.f32.mrf.mxu1 }
 0x253   : > { %v3537_v63 = vpop.f32.mrf.mxu0  ;;  %v3589_v51 = vadd.f32 %v3588_v35, %v791_v47 }
 0x254   : > { %v3538_v2 = vadd.f32 %v3537_v63, %v3485_v60  ;;  %v3590_v37 = vpop.f32.mrf.mxu1 }
 0x255   : > { %v3539_v6 = vpop.f32.mrf.mxu0  ;;  %v3591_v52 = vadd.f32 %v3590_v37, %v795_v49 }
 0x256   : > { %v4608_v10 = vpack.c.bf16 %v3538_v2, %v3536_v0  ;;  %v3540_v13 = vadd.f32 %v3539_v6, %v3487_v7  ;;  %v3592_v38 = vpop.f32.mrf.mxu1 }
 0x257   : > { %v3541_v12 = vpop.f32.mrf.mxu0  ;;  %v3593_v1 = vadd.f32 %v3592_v38, %v791_v47 }
 0x258   : > { %3974 = vst [vmem:[%s6281_s27 + $0x10] sm:$0xff] %v4608_v10  ;;  %v3542_v22 = vadd.f32 %v3541_v12, %v3489_v8  ;;  %v3594_v39 = vpop.f32.mrf.mxu1 }
 0x259   : > { %v3545_v16 = vpop.f32.mrf.mxu0  ;;  %v3595_v56 = vadd.f32 %v3594_v39, %v795_v49 }
 0x25a   : > { %v4613_v21 = vpack.c.bf16 %v3542_v22, %v3540_v13  ;;  %v3546_v4 = vadd.f32 %v3545_v16, %v3493_v15  ;;  %v3598_v33 = vpop.f32.mrf.mxu1 }
 0x25b   : > { %v3547_v24 = vpop.f32.mrf.mxu0  ;;  %v3599_v50 = vadd.f32 %v3598_v33, %v791_v47 }
 0x25c   : > { %3979 = vst [vmem:[%s6281_s27 + $0x34] sm:$0xff] %v4613_v21  ;;  %v3548_v26 = vadd.f32 %v3547_v24, %v3495_v18  ;;  %v3600_v40 = vpop.f32.mrf.mxu1 }
 0x25d   : > { %v3549_v28 = vpop.f32.mrf.mxu0  ;;  %v3601_v0 = vadd.f32 %v3600_v40, %v795_v49 }
 0x25e   : > { %v4618_v30 = vpack.c.bf16 %v3548_v26, %v3546_v4  ;;  %v3550_v5 = vadd.f32 %v3549_v28, %v3497_v36  ;;  %v3602_v45 = vpop.f32.mrf.mxu1 }
 0x25f   : > { %v3551_v32 = vpop.f32.mrf.mxu0  ;;  %v3603_v9 = vadd.f32 %v3602_v45, %v791_v47  ;;  %v4136_v47 = vld [vmem:[%s6231_s20 + $0x8] ss:$0 sm:$0xff] }
 0x260   : > { %3984 = vst [vmem:[%s6281_s27 + $0x58] sm:$0xff] %v4618_v30  ;;  %v3552_v14 = vadd.f32 %v3551_v32, %v3499_v19  ;;  %v3604_v42 = vpop.f32.mrf.mxu1 }
 0x261   : > { %v3605_v22 = vadd.f32 %v3604_v42, %v795_v49 }
 0x262   : > { %v4623_v34 = vpack.c.bf16 %v3552_v14, %v3550_v5 }
 0x264   : > { %3989 = vst [vmem:[%s6281_s27 + $0x7c] sm:$0xff] %v4623_v34 }
 0x291   : > { %v3641_v41 = vpop.f32.mrf.mxu0 }
 0x292   : > { %v3694_v48 = vpop.f32.mrf.mxu1  ;;  %v3642_v53 = vadd.f32 %v3641_v41, %v3589_v51 }
 0x293   : > { %v3643_v27 = vpop.f32.mrf.mxu0 }
 0x294   : > { %v3696_v54 = vpop.f32.mrf.mxu1  ;;  %v3644_v55 = vadd.f32 %v3643_v27, %v3591_v52  ;;  %v3695_v25 = vadd.f32 %v3694_v48, %v3642_v53 }
 0x295   : > { %v3645_v29 = vpop.f32.mrf.mxu0 }
 0x296   : > { %v3698_v57 = vpop.f32.mrf.mxu1  ;;  %v3697_v31 = vadd.f32 %v3696_v54, %v3644_v55  ;;  %v3646_v46 = vadd.f32 %v3645_v29, %v3593_v1 }
 0x297   : > { %v3647_v59 = vpop.f32.mrf.mxu0 }
 0x298   : > { %v3700_v60 = vpop.f32.mrf.mxu1  ;;  %v4609_v58 = vpack.c.bf16 %v3697_v31, %v3695_v25  ;;  %v3648_v61 = vadd.f32 %v3647_v59, %v3595_v56  ;;  %v3699_v2 = vadd.f32 %v3698_v57, %v3646_v46 }
 0x299   : > { %v3651_v62 = vpop.f32.mrf.mxu0 }
 0x29a   : > { %v3704_v63 = vpop.f32.mrf.mxu1  ;;  %3975 = vst [vmem:[%s6281_s27 + $0x18] sm:$0xff] %v4609_v58  ;;  %v3701_v3 = vadd.f32 %v3700_v60, %v3648_v61  ;;  %v3652_v6 = vadd.f32 %v3651_v62, %v3599_v50 }
 0x29b   : > { %v3653_v7 = vpop.f32.mrf.mxu0 }
 0x29c   : > { %v3706_v8 = vpop.f32.mrf.mxu1  ;;  %v4614_v10 = vpack.c.bf16 %v3701_v3, %v3699_v2  ;;  %v3654_v11 = vadd.f32 %v3653_v7, %v3601_v0  ;;  %v3705_v15 = vadd.f32 %v3704_v63, %v3652_v6 }
 0x29d   : > { %v3655_v12 = vpop.f32.mrf.mxu0 }
 0x29e   : > { %v3708_v13 = vpop.f32.mrf.mxu1  ;;  %3980 = vst [vmem:[%s6281_s27 + $0x3c] sm:$0xff] %v4614_v10  ;;  %v3656_v16 = vadd.f32 %v3655_v12, %v3603_v9  ;;  %v3707_v17 = vadd.f32 %v3706_v8, %v3654_v11 }
 0x29f   : > { %v3657_v18 = vpop.f32.mrf.mxu0 }
 0x2a0   : > { %v3710_v20 = vpop.f32.mrf.mxu1  ;;  %v4619_v21 = vpack.c.bf16 %v3707_v17, %v3705_v15  ;;  %v3658_v23 = vadd.f32 %v3657_v18, %v3605_v22  ;;  %v3709_v24 = vadd.f32 %v3708_v13, %v3656_v16 }
 0x2a2   : > { %3985 = vst [vmem:[%s6281_s27 + $0x60] sm:$0xff] %v4619_v21  ;;  %v3711_v4 = vadd.f32 %v3710_v20, %v3658_v23 }
 0x2a4   : > { %v4624_v26 = vpack.c.bf16 %v3711_v4, %v3709_v24 }
 0x2a6   : > { %3990 = vst [vmem:[%s6281_s27 + $0x84] sm:$0xff] %v4624_v26 }
 0x2b1   : > { %v4643_v28 = vpop.f32.mrf.mxu0 }
 0x2b2   : > { %v4671_v36 = vpop.f32.mrf.mxu1 }
 0x2b3   : > { %v4644_v19 = vpop.f32.mrf.mxu0 }
 0x2b4   : > { %v4672_v30 = vpop.f32.mrf.mxu1  ;;  %v4645_v43 = vadd.f32 %v4644_v19, %v4643_v28 }
 0x2b5   : > { %v4646_v32 = vpop.f32.mrf.mxu0  ;;  %v4673_v54 = vadd.f32 %v4672_v30, %v4671_v36 }
 0x2b6   : > { %v4674_v5 = vpop.f32.mrf.mxu1  ;;  %v3748_v41 = vadd.f32 %v4645_v43, %v4136_v47 }
 0x2b7   : > { %v4647_v14 = vpop.f32.mrf.mxu0 }
 0x2b8   : > { %v4675_v35 = vpop.f32.mrf.mxu1  ;;  %v4648_v49 = vadd.f32 %v4647_v14, %v4646_v32  ;;  %v3797_v25 = vadd.f32 %v4673_v54, %v3748_v41 }
 0x2b9   : > { %v4649_v34 = vpop.f32.mrf.mxu0  ;;  %v4676_v60 = vadd.f32 %v4675_v35, %v4674_v5 }
 0x2ba   : > { %v4677_v37 = vpop.f32.mrf.mxu1  ;;  %v3751_v1 = vadd.f32 %v4648_v49, %v4136_v47 }
 0x2bb   : > { %v4650_v38 = vpop.f32.mrf.mxu0 }
 0x2bc   : > { %v4678_v39 = vpop.f32.mrf.mxu1  ;;  %v4651_v44 = vadd.f32 %v4650_v38, %v4649_v34  ;;  %v3800_v63 = vadd.f32 %v4676_v60, %v3751_v1 }
 0x2bd   : > { %v4652_v33 = vpop.f32.mrf.mxu0  ;;  %v4679_v52 = vadd.f32 %v4678_v39, %v4677_v37 }
 0x2be   : > { %v4680_v40 = vpop.f32.mrf.mxu1  ;;  %v3756_v48 = vadd.f32 %v4651_v44, %v4136_v47 }
 0x2bf   : > { %v4653_v45 = vpop.f32.mrf.mxu0 }
 0x2c0   : > { %v4654_v42 = vadd.f32 %v4653_v45, %v4652_v33  ;;  %v4681_v51 = vpop.f32.mrf.mxu1  ;;  %v3805_v31 = vadd.f32 %v4679_v52, %v3756_v48 }
 0x2c1   : > { %v4682_v29 = vadd.f32 %v4681_v51, %v4680_v40 }
 0x2c2   : > { %v3759_v55 = vadd.f32 %v4654_v42, %v4136_v47 }
 0x2c4   : > { %v3808_v0 = vadd.f32 %v4682_v29, %v3759_v55 }
 0x2d1   : > { %v4699_v53 = vpop.f32.mrf.mxu0 }
 0x2d2   : > { %v4705_v27 = vpop.f32.mrf.mxu1 }
 0x2d3   : > { %v4700_v57 = vpop.f32.mrf.mxu0 }
 0x2d4   : > { %v4706_v56 = vpop.f32.mrf.mxu1  ;;  %v4701_v46 = vadd.f32 %v4700_v57, %v4699_v53 }
 0x2d5   : > { %v4707_v59 = vadd.f32 %v4706_v56, %v4705_v27  ;;  %v4702_v50 = vpop.f32.mrf.mxu0 }
 0x2d6   : > { %v4708_v58 = vpop.f32.mrf.mxu1  ;;  %v3846_v61 = vadd.f32 %v4701_v46, %v3797_v25 }
 0x2d7   : > { %v3854_v62 = vadd.f32 %v4707_v59, %v3805_v31  ;;  %v4703_v2 = vpop.f32.mrf.mxu0 }
 0x2d8   : > { %v4709_v3 = vpop.f32.mrf.mxu1  ;;  %v4610_v6 = vpack.c.bf16 %v3846_v61, %v3846_v61  ;;  %v4704_v8 = vadd.f32 %v4703_v2, %v4702_v50 }
 0x2d9   : > { %v4620_v7 = vpack.c.bf16 %v3854_v62, %v3854_v62  ;;  %v4710_v9 = vadd.f32 %v4709_v3, %v4708_v58 }
 0x2da   : > { %3976 = vst [vmem:[%s6281_s27 + $0x20] sm:$0xf] %v4610_v6  ;;  %v3849_v10 = vadd.f32 %v4704_v8, %v3800_v63 }
 0x2db   : > { %3986 = vst [vmem:[%s6281_s27 + $0x68] sm:$0xf] %v4620_v7  ;;  %v3857_v11 = vadd.f32 %v4710_v9, %v3808_v0 }
 0x2dc   : > { %v4615_v12 = vpack.c.bf16 %v3849_v10, %v3849_v10 }
 0x2dd   : > { %v4625_v13 = vpack.c.bf16 %v3857_v11, %v3857_v11 }
 0x2de   : > { %3981 = vst [vmem:[%s6281_s27 + $0x44] sm:$0xf] %v4615_v12 }
 0x2df   : > { %3991 = vst [vmem:[%s6281_s27 + $0x8c] sm:$0xf] %v4625_v13 }
 0x2e0   : > { %5576 = shalt.err (!%p5573_p6)
}
 0x2e1   : > { %s5577_s29 = scalar_lea.hbm %s6468_s15, 2304  ;;  %s5581_s5 = scalar_lea.hbm %s6523_s3, 4608 }
 0x2e2   : > { %p5578_p8 = scmp.ne.s32.totalorder %s6468_s15, %s5577_s29  ;;  %p5582_p11 = scmp.lt.s32.totalorder %s6468_s15, %s6523_s3 }
 0x2e3   : > { %p5583_p12 = scmp.lt.s32.totalorder %s5581_s5, %s5577_s29 }
 0x2e4   : > { %p5579_p5 = pnand %p5578_p8, %p6536_p10 }
 0x2e5   : > { %p5584_p13 = por %p5583_p12, %p5582_p11 }
 0x2e6   : > { %p5580_p9 = pneg %p5579_p5 }
 0x2e8   : > { %p5585_p7 = pnand %p5584_p13, %p5580_p9 }
 0x2ea   : > { %5588 = shalt.err (!%p5585_p7)
}
 0x2eb   : > { %s5658_s27 = smov 576   ;;  %s5659_s10 = smov 1152  }
 0x2ec   : > { %s5660_s6 = smov 36  }
 0x2ed   : > { %4740 = dma.vmem_to_hbm [thread:$0]  (%p6536_p10), %s6470_s19, 2304, %s6468_s15, %s3993_s8, %s5658_s27, %s5659_s10, %s5660_s6  }
 0x2ee PF: > { %s4024_s4 = sand.u32 1, %s5627_s12   ;;  %p6537_p2 = scmp.ne.s32.totalorder %s6530_s26, 0 }
 0x2ef   : > { %p6538_p1 = scmp.ge.s32.totalorder %s5647_s17, 2  ;;  %s4025_s9 = scalar_lea.sflag [#allocation4], %s4024_s4 }
 0x2f1   : > { %p4754_p0 = pnand %p6538_p1, %p6537_p2 }
 0x2f3   : > { %p4755_p3 = pneg %p4754_p0 }
 0x2f5   : > { %5622 = dma.done.wait (%p4755_p3), %s4025_s9, 2304  }
 0x2f6   : > { %5624 = vsyncadd (%p4755_p3), %s4025_s9, 4294964992  ;;  %s20_s17 = sadd.s32 1, %s5647_s17   ;;  %s6539_s12 = smov %s5631_s13 }
 0x2f7   : > { %p17_p4 = scmp.ge.s32.totalorder %s20_s17, 4   ;;  %s6540_s13 = smov %s5635_s14 }
 0x2f8   : > { %s6541_s14 = smov %s5729_s24  ;;  %s6542_s15 = smov %s5643_s16 }
 0x2f9   : > { %s6543_s16 = smov %s6545_s18  ;;  %19 = sbr.rel (!%p17_p4) target bundleno = 7 (0x7), region = 94 }
 0x2fe   :  { %4030 = vsyncpa [#allocation3], 1 }
 0x2ff   :  { %4032 = vsyncpa [#allocation3 + $0x1], 1 }
 0x300   :  { %4033 = vsyncpa [#allocation6], 1 }
 0x301   :  { %4035 = vsyncpa [#allocation6 + $0x1], 1 }
 0x302   :  { %4036 = vsyncpa [#allocation4], 1 }
 0x303   :  { %4038 = vsyncpa [#allocation4 + $0x1], 1 }

</bundles_post_ra>
